<compile_context>
chip_gen: v7x
topology: tpu7x:2x2x1
jax: 0.10.0
libtpu: 0.0.40
codegen_flags: <defaults>
</compile_context>

<pallas_src>
import functools
import math

import jax
import jax.numpy as jnp
from jax.experimental import pallas as pl
from jax.experimental.pallas import tpu as pltpu

_BN_EPS = 1e-5
_INV_SQRT2 = 1.0 / math.sqrt(2.0)

_MAX_TILE_M = 8192                 # hard cap on rows per M-tile
_VMEM_STREAM_BUDGET = 12 << 20     # bytes for double-buffered x+y streams
_VMEM_LIMIT_BYTES = 32 << 20       # explicit scoped-VMEM request (v7x-safe)


def _round_up(x, m):
    return (x + m - 1) // m * m


def _pad_rows(x, m_pad):
    m = x.shape[0]
    if m_pad == m:
        return x
    return jnp.pad(x, ((0, m_pad - m), (0, 0)))


def _pick_tile_m(M, K, N):
    """Pick the M-tile size for one layer.

    Preference order:
      * tile_m divides M exactly (no jnp.pad / output-slice HBM copies),
      * tile_m is a multiple of 8 (block-shape constraint),
      * as large as the double-buffered VMEM stream budget allows,
      * gives >= 2 tiles whenever M allows it (v7x megacore sharding).
    Returns (tile_m, needs_padding).
    """
    bytes_per_row = (K + N) * 4 * 2          # f32 x-block + y-block, 2 buffers
    cap = max(8, (_VMEM_STREAM_BUDGET // bytes_per_row) // 8 * 8)
    cap = min(cap, _MAX_TILE_M)
    if M % 8 == 0:
        if M >= 16:
            upper = max(8, (min(cap, M // 2) // 8) * 8)
            for t in range(upper, 7, -8):
                if M % t == 0:
                    return t, False
            return 8, False                  # unreachable: 8 divides M
        return M, False                      # M == 8: single full-extent tile
    # Fallback: M not a multiple of 8 -> pad; only the last tile is masked.
    return min(_round_up(M, 8), cap), True


# ---------------------------------------------------------------------------
# Pallas kernel
# ---------------------------------------------------------------------------
def _gemm_gelu_stats_kernel(x_ref, w_ref, b_ref, y_ref, stats_ref, *,
                            inv_count, last_valid, last_inv_count):
    """One M-tile of  y = GELU(x @ w + b)  plus per-tile BatchNorm partials.

    x_ref:     (TILE_M, K)  channels-last im2col block (prev BN folded in w/b)
    w_ref:     (K, N)       effective conv weight
    b_ref:     (1, N)       effective conv bias
    y_ref:     (TILE_M, N)  GELU output (pre-BatchNorm of this layer)
    stats_ref: (1, 2, N)    per-tile [row-sum, mean-shifted M2]
    inv_count:      static 1/TILE_M
    last_valid:     static valid-row count of the LAST tile (None: no padding)
    last_inv_count: static 1/last_valid (None: no padding)
    """
    # Memory-bound at these K/N, so HIGHEST MXU precision is free here and
    # keeps f32-exact agreement with the XLA reference.  Re-evaluate (DEFAULT
    # or bf16 operands) only if profiling shows the MXU binding.
    y = jnp.dot(x_ref[...], w_ref[...],
                preferred_element_type=jnp.float32,
                precision=jax.lax.Precision.HIGHEST) + b_ref[...]
    # Exact GELU (erf form) == torch.nn.GELU() default.
    # TODO(synk): if bundle dumps show VALU/vst as the binding slot, do
    # GELU+stats on a lane-dense (N, TILE_M) transpose of the MXU result.
    y = 0.5 * y * (1.0 + jax.lax.erf(y * _INV_SQRT2))
    y_ref[...] = y

    # Per-tile mean-shifted partials (combined outside with Chan's rule).
    s = jnp.sum(y, axis=0, keepdims=True)               # (1, N)
    d = y - s * inv_count
    stats_ref[0, 0:1, :] = s
    stats_ref[0, 1:2, :] = jnp.sum(d * d, axis=0, keepdims=True)

    if last_valid is not None:
        # Only the final tile carries zero-padded rows: redo its stats masked.
        @pl.when(pl.program_id(0) == pl.num_programs(0) - 1)
        def _():
            tile_m = y.shape[0]
            rows = jax.lax.broadcasted_iota(jnp.int32, (tile_m, 1), 0)
            mask = rows < last_valid
            ym = jnp.where(mask, y, 0.0)
            sm = jnp.sum(ym, axis=0, keepdims=True)
            dm = jnp.where(mask, ym - sm * last_inv_count, 0.0)
            stats_ref[0, 0:1, :] = sm
            stats_ref[0, 1:2, :] = jnp.sum(dm * dm, axis=0, keepdims=True)


# ---------------------------------------------------------------------------
# Pallas wrapper
# ---------------------------------------------------------------------------
def _gemm_gelu_stats(x2d, w_kn, b_n):
    """Tiled fused GEMM + bias + GELU with single-pass BN batch statistics.

    x2d: (M, K) f32,  w_kn: (K, N) f32,  b_n: (N,) f32
    Returns y (M, N) f32 (pre-BN), chan_mean (N,), chan_var (N,) (biased).
    """
    M, K = x2d.shape
    N = w_kn.shape[1]
    tile_m, padded = _pick_tile_m(M, K, N)
    m_pad = _round_up(M, tile_m) if padded else M
    num_tiles = m_pad // tile_m
    last_valid = (M - (num_tiles - 1) * tile_m) if padded else None

    kernel = functools.partial(
        _gemm_gelu_stats_kernel,
        inv_count=1.0 / tile_m,
        last_valid=last_valid,
        last_inv_count=(1.0 / last_valid) if padded else None)

    y_pad, stats = pl.pallas_call(
        kernel,
        out_shape=(
            jax.ShapeDtypeStruct((m_pad, N), jnp.float32),
            jax.ShapeDtypeStruct((num_tiles, 2, N), jnp.float32),
        ),
        grid=(num_tiles,),
        in_specs=[
            pl.BlockSpec((tile_m, K), lambda i: (i, 0)),
            pl.BlockSpec((K, N), lambda i: (0, 0)),
            pl.BlockSpec((1, N), lambda i: (0, 0)),
        ],
        out_specs=(
            pl.BlockSpec((tile_m, N), lambda i: (i, 0)),
            pl.BlockSpec((1, 2, N), lambda i: (i, 0, 0)),
        ),
        compiler_params=pltpu.CompilerParams(
            dimension_semantics=("parallel",),
            vmem_limit_bytes=_VMEM_LIMIT_BYTES),
    )(_pad_rows(x2d, m_pad), w_kn, b_n.reshape(1, N))

    y = y_pad if not padded else y_pad[:M]

    # Chan's parallel combination of per-tile (sum, M2) partials.
    counts = jnp.full((num_tiles,), float(tile_m), jnp.float32)
    if padded:
        counts = counts.at[-1].set(float(last_valid))
    total = float(M)
    sums = stats[:, 0, :]                        # (T, N)
    m2s = stats[:, 1, :]                         # (T, N)
    mean = jnp.sum(sums, axis=0) / total         # (N,)
    tile_means = sums / counts[:, None]
    m2 = jnp.sum(m2s, axis=0) + jnp.sum(
        counts[:, None] * jnp.square(tile_means - mean[None, :]), axis=0)
    var = jnp.maximum(m2 / total, 0.0)
    return y, mean, var


def _bn_scale_shift(mean, var, gamma, beta):
    """Training-mode BatchNorm (batch mean / biased var) as per-channel affine."""
    rstd = jax.lax.rsqrt(var + _BN_EPS)
    scale = gamma * rstd
    shift = beta - mean * scale
    return scale, shift


# ---------------------------------------------------------------------------
# Forward pass
# ---------------------------------------------------------------------------
def conv2d_3dim_forward(features_dim3, params, dim_list):
    """Pallas implementation of Conv2d_3Dim.forward (training-mode BN).

    features_dim3: (bs, input_c, S, d1, d2, d3)
    returns:       (bs, conv_mid_channels[3], S, 1)   (NCHW)
    """
    bs, input_c, S = features_dim3.shape[:3]
    d1, d2, d3 = dim_list
    assert tuple(features_dim3.shape[3:]) == (d1, d2, d3), (
        "features_dim3 trailing dims must equal dim_list (row order assumes "
        "d3 fastest-varying, then d2, then d1)")
    W = d1 * d2 * d3

    # One (small) NCHW -> channels-last transpose up front; none between layers.
    x = features_dim3.reshape(bs, input_c, S, W).astype(jnp.float32)
    y = jnp.transpose(x, (0, 2, 3, 1)).reshape(bs * S * W, input_c)

    # Per-channel affine carried over from the *previous* layer's BatchNorm
    # (identity before the first conv).
    scale = jnp.ones((input_c,), jnp.float32)
    shift = jnp.zeros((input_c,), jnp.float32)

    for name, k in (("d3", d3), ("d2", d2), ("d1", d1)):
        w, b, gamma, beta = params[name]
        cout, cin = w.shape[0], w.shape[1]
        assert y.shape[0] % k == 0, (
            f"layer {name}: row count {y.shape[0]} not divisible by stride {k}")

        # Conv weight (C_out, C_in, 1, k) -> (k*C_in, C_out); row = j*C_in + ci.
        w_kn = jnp.transpose(w[:, :, 0, :], (2, 1, 0)).reshape(k * cin, cout)

        # Fold previous layer's BatchNorm into this layer's GEMM.
        col_scale = jnp.tile(scale, k)            # (k*C_in,)
        col_shift = jnp.tile(shift, k)            # (k*C_in,)
        w_eff = w_kn * col_scale[:, None]
        b_eff = b + col_shift @ w_kn

        # Channels-last bitcast reshape: (M_prev, C_in) -> (M, k*C_in).
        m_rows = y.shape[0] // k
        x2d = y.reshape(m_rows, k * cin)

        y, chan_mean, chan_var = _gemm_gelu_stats(x2d, w_eff, b_eff)
        scale, shift = _bn_scale_shift(chan_mean, chan_var, gamma, beta)

    # Final layer's BatchNorm: tiny per-channel affine in plain XLA so it
    # fuses with the output reshape/transpose (no extra pallas_call).
    out2d = y * scale[None, :] + shift[None, :]    # (bs*S, C_out3)

    cout3 = out2d.shape[1]
    return jnp.transpose(out2d.reshape(bs, S, 1, cout3), (0, 3, 1, 2))


# ---------------------------------------------------------------------------
# Pure-JAX reference (for correctness check of the Pallas path)
# ---------------------------------------------------------------------------
def _ref_layer(x, w, b, gamma, beta, k):
    y = jax.lax.conv_general_dilated(
        x, w, window_strides=(1, k), padding="VALID",
        dimension_numbers=("NCHW", "OIHW", "NCHW"),
        precision=jax.lax.Precision.HIGHEST)
    y = y + b.reshape(1, -1, 1, 1)
    y = 0.5 * y * (1.0 + jax.lax.erf(y * _INV_SQRT2))
    mean = jnp.mean(y, axis=(0, 2, 3), keepdims=True)
    var = jnp.var(y, axis=(0, 2, 3), keepdims=True)
    y = (y - mean) * jax.lax.rsqrt(var + _BN_EPS)
    return y * gamma.reshape(1, -1, 1, 1) + beta.reshape(1, -1, 1, 1)


def conv2d_3dim_reference(features_dim3, params, dim_list):
    bs, input_c, S = features_dim3.shape[:3]
    x = features_dim3.reshape(bs, input_c, S, -1)
    d1, d2, d3 = dim_list
    x = _ref_layer(x, *params["d3"], k=d3)
    x = _ref_layer(x, *params["d2"], k=d2)
    x = _ref_layer(x, *params["d1"], k=d1)
    return x


def init_params(key, conv_mid_channels, dim_list):
    """Deterministic synthetic init matching the PyTorch module's shapes."""
    c0, c1, c2, c3 = conv_mid_channels
    d1, d2, d3 = dim_list
    params = {}
    for name, (cin, cout, k) in {
        "d3": (c0, c1, d3),
        "d2": (c1, c2, d2),
        "d1": (c2, c3, d1),
    }.items():
        key, kw, kb = jax.random.split(key, 3)
        w = 0.1 * jax.random.normal(kw, (cout, cin, 1, k), jnp.float32)
        b = 0.1 * jax.random.normal(kb, (cout,), jnp.float32)
        gamma = jnp.ones((cout,), jnp.float32)   # BatchNorm2d default init
        beta = jnp.zeros((cout,), jnp.float32)
        params[name] = (w, b, gamma, beta)
    return params


# TODO(synk): BatchNorm running-stat (momentum) buffer updates are training-time
# bookkeeping that does not affect the forward output; not implemented here.

if __name__ == "__main__":
    # Small shapes consistent with the module's forward contract.
    bs, S = 2, 8
    conv_mid_channels = [2, 8, 16, 32]   # [input_c, mid1, mid2, mid3]
    dim_list = [4, 2, 8]                 # [d1, d2, d3]

    key = jax.random.PRNGKey(0)
    key, kx = jax.random.split(key)
    x = jax.random.normal(
        kx, (bs, conv_mid_channels[0], S, *dim_list), jnp.float32)
    params = init_params(key, conv_mid_channels, dim_list)

    fwd = jax.jit(lambda feats, p: conv2d_3dim_forward(feats, p, dim_list))
    out = jax.block_until_ready(fwd(x, params))
    ref = jax.block_until_ready(conv2d_3dim_reference(x, params, dim_list))

    assert out.shape == (bs, conv_mid_channels[3], S, 1), out.shape
    assert jnp.allclose(out, ref, atol=1e-4, rtol=1e-4), (
        float(jnp.max(jnp.abs(out - ref))))
    print("KERNEL_OK")
</pallas_src>

<mosaic_0001>
module attributes {stable_mosaic.version = 11 : i64} {
  func.func @_gemm_gelu_stats_kernel(%arg0: i32, %arg1: memref<64x16xf32, #tpu.memory_space<vmem>>, %arg2: memref<16x8xf32, #tpu.memory_space<vmem>>, %arg3: memref<1x8xf32, #tpu.memory_space<vmem>>, %arg4: memref<64x8xf32, #tpu.memory_space<vmem>>, %arg5: memref<1x2x8xf32, #tpu.memory_space<vmem>>) attributes {dimension_semantics = [#tpu.dimension_semantics<parallel>], iteration_bounds = array<i64: 2>, scalar_prefetch = 0 : i64, scratch_operands = 0 : i64, tpu.core_type = #tpu.core_type<tc>, window_params = [{transform_indices = @transform_0, window_bounds = array<i64: 64, 16>}, {pipeline_mode = #tpu.pipeline_mode<synchronous>, transform_indices = @transform_1, window_bounds = array<i64: 16, 8>}, {pipeline_mode = #tpu.pipeline_mode<synchronous>, transform_indices = @transform_2, window_bounds = array<i64: 1, 8>}, {transform_indices = @transform_3, window_bounds = array<i64: 64, 8>}, {transform_indices = @transform_4, window_bounds = array<i64: 1, 2, 8>}]} {
    %c0 = arith.constant 0 : index
    %c0_0 = arith.constant 0 : index
    %0 = vector.load %arg1[%c0, %c0_0] : memref<64x16xf32, #tpu.memory_space<vmem>>, vector<64x16xf32>
    %c0_1 = arith.constant 0 : index
    %c0_2 = arith.constant 0 : index
    %1 = vector.load %arg2[%c0_1, %c0_2] : memref<16x8xf32, #tpu.memory_space<vmem>>, vector<16x8xf32>
    %cst = arith.constant dense<0.000000e+00> : vector<64x8xf32>
    %2 = tpu.matmul %0, %1, %cst {dimension_numbers = #tpu.dot_dimension_numbers<[1], [0], [0], [1], [0, 0, 1, 1], [], []>, precision = #tpu.contract_precision<fp32>} : vector<64x16xf32>, vector<16x8xf32>, vector<64x8xf32> -> vector<64x8xf32>
    %c0_3 = arith.constant 0 : index
    %c0_4 = arith.constant 0 : index
    %3 = vector.load %arg3[%c0_3, %c0_4] : memref<1x8xf32, #tpu.memory_space<vmem>>, vector<1x8xf32>
    %4 = vector.broadcast %3 : vector<1x8xf32> to vector<64x8xf32>
    %5 = arith.addf %2, %4 : vector<64x8xf32>
    %cst_5 = arith.constant 5.000000e-01 : f32
    %6 = vector.broadcast %cst_5 : f32 to vector<64x8xf32>
    %7 = arith.mulf %6, %5 : vector<64x8xf32>
    %cst_6 = arith.constant 0.707106769 : f32
    %8 = vector.broadcast %cst_6 : f32 to vector<64x8xf32>
    %9 = arith.mulf %5, %8 : vector<64x8xf32>
    %10 = math.erf %9 : vector<64x8xf32>
    %cst_7 = arith.constant 1.000000e+00 : f32
    %11 = vector.broadcast %cst_7 : f32 to vector<64x8xf32>
    %12 = arith.addf %11, %10 : vector<64x8xf32>
    %13 = arith.mulf %7, %12 : vector<64x8xf32>
    %c0_8 = arith.constant 0 : index
    %c0_9 = arith.constant 0 : index
    %14 = vector.load %arg4[%c0_8, %c0_9] : memref<64x8xf32, #tpu.memory_space<vmem>>, vector<64x8xf32>
    tpu.vector_store %arg4[%c0_8, %c0_9], %13 {strides = array<i32>} : memref<64x8xf32, #tpu.memory_space<vmem>>, vector<64x8xf32>,
    %cst_10 = arith.constant dense<0.000000e+00> : vector<8xf32>
    %15 = vector.multi_reduction <add>, %13, %cst_10 [0] : vector<64x8xf32> to vector<8xf32>
    %16 = vector.shape_cast %15 : vector<8xf32> to vector<1x8xf32>
    %cst_11 = arith.constant 1.562500e-02 : f32
    %17 = vector.broadcast %cst_11 : f32 to vector<1x8xf32>
    %18 = arith.mulf %16, %17 : vector<1x8xf32>
    %19 = vector.broadcast %18 : vector<1x8xf32> to vector<64x8xf32>
    %20 = arith.subf %13, %19 : vector<64x8xf32>
    %c0_12 = arith.constant 0 : index
    %c0_13 = arith.constant 0 : index
    %c0_14 = arith.constant 0 : index
    %21 = vector.load %arg5[%c0_12, %c0_13, %c0_14] : memref<1x2x8xf32, #tpu.memory_space<vmem>>, vector<1x1x8xf32>
    %22 = vector.shape_cast %21 : vector<1x1x8xf32> to vector<1x8xf32>
    %23 = vector.shape_cast %16 : vector<1x8xf32> to vector<1x1x8xf32>
    tpu.vector_store %arg5[%c0_12, %c0_13, %c0_14], %23 {strides = array<i32>} : memref<1x2x8xf32, #tpu.memory_space<vmem>>, vector<1x1x8xf32>,
    %24 = arith.mulf %20, %20 : vector<64x8xf32>
    %cst_15 = arith.constant dense<0.000000e+00> : vector<8xf32>
    %25 = vector.multi_reduction <add>, %24, %cst_15 [0] : vector<64x8xf32> to vector<8xf32>
    %26 = vector.shape_cast %25 : vector<8xf32> to vector<1x8xf32>
    %c0_16 = arith.constant 0 : index
    %c1 = arith.constant 1 : index
    %c0_17 = arith.constant 0 : index
    %27 = vector.load %arg5[%c0_16, %c1, %c0_17] : memref<1x2x8xf32, #tpu.memory_space<vmem>>, vector<1x1x8xf32>
    %28 = vector.shape_cast %27 : vector<1x1x8xf32> to vector<1x8xf32>
    %29 = vector.shape_cast %26 : vector<1x8xf32> to vector<1x1x8xf32>
    tpu.vector_store %arg5[%c0_16, %c1, %c0_17], %29 {strides = array<i32>} : memref<1x2x8xf32, #tpu.memory_space<vmem>>, vector<1x1x8xf32>,
    return
  }
  func.func @transform_0(%arg0: i32) -> (i32, i32) {
    %c0_i32 = arith.constant 0 : i32
    %c0_i32_0 = arith.constant 0 : i32
    return %arg0, %c0_i32 : i32, i32
  }
  func.func @transform_1(%arg0: i32) -> (i32, i32) {
    %c0_i32 = arith.constant 0 : i32
    %c0_i32_0 = arith.constant 0 : i32
    %c0_i32_1 = arith.constant 0 : i32
    return %c0_i32, %c0_i32_0 : i32, i32
  }
  func.func @transform_2(%arg0: i32) -> (i32, i32) {
    %c0_i32 = arith.constant 0 : i32
    %c0_i32_0 = arith.constant 0 : i32
    %c0_i32_1 = arith.constant 0 : i32
    return %c0_i32, %c0_i32_0 : i32, i32
  }
  func.func @transform_3(%arg0: i32) -> (i32, i32) {
    %c0_i32 = arith.constant 0 : i32
    %c0_i32_0 = arith.constant 0 : i32
    return %arg0, %c0_i32 : i32, i32
  }
  func.func @transform_4(%arg0: i32) -> (i32, i32, i32) {
    %c0_i32 = arith.constant 0 : i32
    %c0_i32_0 = arith.constant 0 : i32
    %c0_i32_1 = arith.constant 0 : i32
    return %arg0, %c0_i32, %c0_i32_0 : i32, i32, i32
  }
}

module attributes {stable_mosaic.version = 11 : i64} {
  func.func @_gemm_gelu_stats_kernel(%arg0: i32, %arg1: memref<32x16xf32, #tpu.memory_space<vmem>>, %arg2: memref<16x16xf32, #tpu.memory_space<vmem>>, %arg3: memref<1x16xf32, #tpu.memory_space<vmem>>, %arg4: memref<32x16xf32, #tpu.memory_space<vmem>>, %arg5: memref<1x2x16xf32, #tpu.memory_space<vmem>>) attributes {dimension_semantics = [#tpu.dimension_semantics<parallel>], iteration_bounds = array<i64: 2>, scalar_prefetch = 0 : i64, scratch_operands = 0 : i64, tpu.core_type = #tpu.core_type<tc>, window_params = [{transform_indices = @transform_0, window_bounds = array<i64: 32, 16>}, {pipeline_mode = #tpu.pipeline_mode<synchronous>, transform_indices = @transform_1, window_bounds = array<i64: 16, 16>}, {pipeline_mode = #tpu.pipeline_mode<synchronous>, transform_indices = @transform_2, window_bounds = array<i64: 1, 16>}, {transform_indices = @transform_3, window_bounds = array<i64: 32, 16>}, {transform_indices = @transform_4, window_bounds = array<i64: 1, 2, 16>}]} {
    %c0 = arith.constant 0 : index
    %c0_0 = arith.constant 0 : index
    %0 = vector.load %arg1[%c0, %c0_0] : memref<32x16xf32, #tpu.memory_space<vmem>>, vector<32x16xf32>
    %c0_1 = arith.constant 0 : index
    %c0_2 = arith.constant 0 : index
    %1 = vector.load %arg2[%c0_1, %c0_2] : memref<16x16xf32, #tpu.memory_space<vmem>>, vector<16x16xf32>
    %cst = arith.constant dense<0.000000e+00> : vector<32x16xf32>
    %2 = tpu.matmul %0, %1, %cst {dimension_numbers = #tpu.dot_dimension_numbers<[1], [0], [0], [1], [0, 0, 1, 1], [], []>, precision = #tpu.contract_precision<fp32>} : vector<32x16xf32>, vector<16x16xf32>, vector<32x16xf32> -> vector<32x16xf32>
    %c0_3 = arith.constant 0 : index
    %c0_4 = arith.constant 0 : index
    %3 = vector.load %arg3[%c0_3, %c0_4] : memref<1x16xf32, #tpu.memory_space<vmem>>, vector<1x16xf32>
    %4 = vector.broadcast %3 : vector<1x16xf32> to vector<32x16xf32>
    %5 = arith.addf %2, %4 : vector<32x16xf32>
    %cst_5 = arith.constant 5.000000e-01 : f32
    %6 = vector.broadcast %cst_5 : f32 to vector<32x16xf32>
    %7 = arith.mulf %6, %5 : vector<32x16xf32>
    %cst_6 = arith.constant 0.707106769 : f32
    %8 = vector.broadcast %cst_6 : f32 to vector<32x16xf32>
    %9 = arith.mulf %5, %8 : vector<32x16xf32>
    %10 = math.erf %9 : vector<32x16xf32>
    %cst_7 = arith.constant 1.000000e+00 : f32
    %11 = vector.broadcast %cst_7 : f32 to vector<32x16xf32>
    %12 = arith.addf %11, %10 : vector<32x16xf32>
    %13 = arith.mulf %7, %12 : vector<32x16xf32>
    %c0_8 = arith.constant 0 : index
    %c0_9 = arith.constant 0 : index
    %14 = vector.load %arg4[%c0_8, %c0_9] : memref<32x16xf32, #tpu.memory_space<vmem>>, vector<32x16xf32>
    tpu.vector_store %arg4[%c0_8, %c0_9], %13 {strides = array<i32>} : memref<32x16xf32, #tpu.memory_space<vmem>>, vector<32x16xf32>,
    %cst_10 = arith.constant dense<0.000000e+00> : vector<16xf32>
    %15 = vector.multi_reduction <add>, %13, %cst_10 [0] : vector<32x16xf32> to vector<16xf32>
    %16 = vector.shape_cast %15 : vector<16xf32> to vector<1x16xf32>
    %cst_11 = arith.constant 3.125000e-02 : f32
    %17 = vector.broadcast %cst_11 : f32 to vector<1x16xf32>
    %18 = arith.mulf %16, %17 : vector<1x16xf32>
    %19 = vector.broadcast %18 : vector<1x16xf32> to vector<32x16xf32>
    %20 = arith.subf %13, %19 : vector<32x16xf32>
    %c0_12 = arith.constant 0 : index
    %c0_13 = arith.constant 0 : index
    %c0_14 = arith.constant 0 : index
    %21 = vector.load %arg5[%c0_12, %c0_13, %c0_14] : memref<1x2x16xf32, #tpu.memory_space<vmem>>, vector<1x1x16xf32>
    %22 = vector.shape_cast %21 : vector<1x1x16xf32> to vector<1x16xf32>
    %23 = vector.shape_cast %16 : vector<1x16xf32> to vector<1x1x16xf32>
    tpu.vector_store %arg5[%c0_12, %c0_13, %c0_14], %23 {strides = array<i32>} : memref<1x2x16xf32, #tpu.memory_space<vmem>>, vector<1x1x16xf32>,
    %24 = arith.mulf %20, %20 : vector<32x16xf32>
    %cst_15 = arith.constant dense<0.000000e+00> : vector<16xf32>
    %25 = vector.multi_reduction <add>, %24, %cst_15 [0] : vector<32x16xf32> to vector<16xf32>
    %26 = vector.shape_cast %25 : vector<16xf32> to vector<1x16xf32>
    %c0_16 = arith.constant 0 : index
    %c1 = arith.constant 1 : index
    %c0_17 = arith.constant 0 : index
    %27 = vector.load %arg5[%c0_16, %c1, %c0_17] : memref<1x2x16xf32, #tpu.memory_space<vmem>>, vector<1x1x16xf32>
    %28 = vector.shape_cast %27 : vector<1x1x16xf32> to vector<1x16xf32>
    %29 = vector.shape_cast %26 : vector<1x16xf32> to vector<1x1x16xf32>
    tpu.vector_store %arg5[%c0_16, %c1, %c0_17], %29 {strides = array<i32>} : memref<1x2x16xf32, #tpu.memory_space<vmem>>, vector<1x1x16xf32>,
    return
  }
  func.func @transform_0(%arg0: i32) -> (i32, i32) {
    %c0_i32 = arith.constant 0 : i32
    %c0_i32_0 = arith.constant 0 : i32
    return %arg0, %c0_i32 : i32, i32
  }
  func.func @transform_1(%arg0: i32) -> (i32, i32) {
    %c0_i32 = arith.constant 0 : i32
    %c0_i32_0 = arith.constant 0 : i32
    %c0_i32_1 = arith.constant 0 : i32
    return %c0_i32, %c0_i32_0 : i32, i32
  }
  func.func @transform_2(%arg0: i32) -> (i32, i32) {
    %c0_i32 = arith.constant 0 : i32
    %c0_i32_0 = arith.constant 0 : i32
    %c0_i32_1 = arith.constant 0 : i32
    return %c0_i32, %c0_i32_0 : i32, i32
  }
  func.func @transform_3(%arg0: i32) -> (i32, i32) {
    %c0_i32 = arith.constant 0 : i32
    %c0_i32_0 = arith.constant 0 : i32
    return %arg0, %c0_i32 : i32, i32
  }
  func.func @transform_4(%arg0: i32) -> (i32, i32, i32) {
    %c0_i32 = arith.constant 0 : i32
    %c0_i32_0 = arith.constant 0 : i32
    %c0_i32_1 = arith.constant 0 : i32
    return %arg0, %c0_i32, %c0_i32_0 : i32, i32, i32
  }
}

module attributes {stable_mosaic.version = 11 : i64} {
  func.func @_gemm_gelu_stats_kernel(%arg0: i32, %arg1: memref<8x64xf32, #tpu.memory_space<vmem>>, %arg2: memref<64x32xf32, #tpu.memory_space<vmem>>, %arg3: memref<1x32xf32, #tpu.memory_space<vmem>>, %arg4: memref<8x32xf32, #tpu.memory_space<vmem>>, %arg5: memref<1x2x32xf32, #tpu.memory_space<vmem>>) attributes {dimension_semantics = [#tpu.dimension_semantics<parallel>], iteration_bounds = array<i64: 2>, scalar_prefetch = 0 : i64, scratch_operands = 0 : i64, tpu.core_type = #tpu.core_type<tc>, window_params = [{transform_indices = @transform_0, window_bounds = array<i64: 8, 64>}, {pipeline_mode = #tpu.pipeline_mode<synchronous>, transform_indices = @transform_1, window_bounds = array<i64: 64, 32>}, {pipeline_mode = #tpu.pipeline_mode<synchronous>, transform_indices = @transform_2, window_bounds = array<i64: 1, 32>}, {transform_indices = @transform_3, window_bounds = array<i64: 8, 32>}, {transform_indices = @transform_4, window_bounds = array<i64: 1, 2, 32>}]} {
    %c0 = arith.constant 0 : index
    %c0_0 = arith.constant 0 : index
    %0 = vector.load %arg1[%c0, %c0_0] : memref<8x64xf32, #tpu.memory_space<vmem>>, vector<8x64xf32>
    %c0_1 = arith.constant 0 : index
    %c0_2 = arith.constant 0 : index
    %1 = vector.load %arg2[%c0_1, %c0_2] : memref<64x32xf32, #tpu.memory_space<vmem>>, vector<64x32xf32>
    %cst = arith.constant dense<0.000000e+00> : vector<8x32xf32>
    %2 = tpu.matmul %0, %1, %cst {dimension_numbers = #tpu.dot_dimension_numbers<[1], [0], [0], [1], [0, 0, 1, 1], [], []>, precision = #tpu.contract_precision<fp32>} : vector<8x64xf32>, vector<64x32xf32>, vector<8x32xf32> -> vector<8x32xf32>
    %c0_3 = arith.constant 0 : index
    %c0_4 = arith.constant 0 : index
    %3 = vector.load %arg3[%c0_3, %c0_4] : memref<1x32xf32, #tpu.memory_space<vmem>>, vector<1x32xf32>
    %4 = vector.broadcast %3 : vector<1x32xf32> to vector<8x32xf32>
    %5 = arith.addf %2, %4 : vector<8x32xf32>
    %cst_5 = arith.constant 5.000000e-01 : f32
    %6 = vector.broadcast %cst_5 : f32 to vector<8x32xf32>
    %7 = arith.mulf %6, %5 : vector<8x32xf32>
    %cst_6 = arith.constant 0.707106769 : f32
    %8 = vector.broadcast %cst_6 : f32 to vector<8x32xf32>
    %9 = arith.mulf %5, %8 : vector<8x32xf32>
    %10 = math.erf %9 : vector<8x32xf32>
    %cst_7 = arith.constant 1.000000e+00 : f32
    %11 = vector.broadcast %cst_7 : f32 to vector<8x32xf32>
    %12 = arith.addf %11, %10 : vector<8x32xf32>
    %13 = arith.mulf %7, %12 : vector<8x32xf32>
    %c0_8 = arith.constant 0 : index
    %c0_9 = arith.constant 0 : index
    %14 = vector.load %arg4[%c0_8, %c0_9] : memref<8x32xf32, #tpu.memory_space<vmem>>, vector<8x32xf32>
    tpu.vector_store %arg4[%c0_8, %c0_9], %13 {strides = array<i32>} : memref<8x32xf32, #tpu.memory_space<vmem>>, vector<8x32xf32>,
    %cst_10 = arith.constant dense<0.000000e+00> : vector<32xf32>
    %15 = vector.multi_reduction <add>, %13, %cst_10 [0] : vector<8x32xf32> to vector<32xf32>
    %16 = vector.shape_cast %15 : vector<32xf32> to vector<1x32xf32>
    %cst_11 = arith.constant 1.250000e-01 : f32
    %17 = vector.broadcast %cst_11 : f32 to vector<1x32xf32>
    %18 = arith.mulf %16, %17 : vector<1x32xf32>
    %19 = vector.broadcast %18 : vector<1x32xf32> to vector<8x32xf32>
    %20 = arith.subf %13, %19 : vector<8x32xf32>
    %c0_12 = arith.constant 0 : index
    %c0_13 = arith.constant 0 : index
    %c0_14 = arith.constant 0 : index
    %21 = vector.load %arg5[%c0_12, %c0_13, %c0_14] : memref<1x2x32xf32, #tpu.memory_space<vmem>>, vector<1x1x32xf32>
    %22 = vector.shape_cast %21 : vector<1x1x32xf32> to vector<1x32xf32>
    %23 = vector.shape_cast %16 : vector<1x32xf32> to vector<1x1x32xf32>
    tpu.vector_store %arg5[%c0_12, %c0_13, %c0_14], %23 {strides = array<i32>} : memref<1x2x32xf32, #tpu.memory_space<vmem>>, vector<1x1x32xf32>,
    %24 = arith.mulf %20, %20 : vector<8x32xf32>
    %cst_15 = arith.constant dense<0.000000e+00> : vector<32xf32>
    %25 = vector.multi_reduction <add>, %24, %cst_15 [0] : vector<8x32xf32> to vector<32xf32>
    %26 = vector.shape_cast %25 : vector<32xf32> to vector<1x32xf32>
    %c0_16 = arith.constant 0 : index
    %c1 = arith.constant 1 : index
    %c0_17 = arith.constant 0 : index
    %27 = vector.load %arg5[%c0_16, %c1, %c0_17] : memref<1x2x32xf32, #tpu.memory_space<vmem>>, vector<1x1x32xf32>
    %28 = vector.shape_cast %27 : vector<1x1x32xf32> to vector<1x32xf32>
    %29 = vector.shape_cast %26 : vector<1x32xf32> to vector<1x1x32xf32>
    tpu.vector_store %arg5[%c0_16, %c1, %c0_17], %29 {strides = array<i32>} : memref<1x2x32xf32, #tpu.memory_space<vmem>>, vector<1x1x32xf32>,
    return
  }
  func.func @transform_0(%arg0: i32) -> (i32, i32) {
    %c0_i32 = arith.constant 0 : i32
    %c0_i32_0 = arith.constant 0 : i32
    return %arg0, %c0_i32 : i32, i32
  }
  func.func @transform_1(%arg0: i32) -> (i32, i32) {
    %c0_i32 = arith.constant 0 : i32
    %c0_i32_0 = arith.constant 0 : i32
    %c0_i32_1 = arith.constant 0 : i32
    return %c0_i32, %c0_i32_0 : i32, i32
  }
  func.func @transform_2(%arg0: i32) -> (i32, i32) {
    %c0_i32 = arith.constant 0 : i32
    %c0_i32_0 = arith.constant 0 : i32
    %c0_i32_1 = arith.constant 0 : i32
    return %c0_i32, %c0_i32_0 : i32, i32
  }
  func.func @transform_3(%arg0: i32) -> (i32, i32) {
    %c0_i32 = arith.constant 0 : i32
    %c0_i32_0 = arith.constant 0 : i32
    return %arg0, %c0_i32 : i32, i32
  }
  func.func @transform_4(%arg0: i32) -> (i32, i32, i32) {
    %c0_i32 = arith.constant 0 : i32
    %c0_i32_0 = arith.constant 0 : i32
    %c0_i32_1 = arith.constant 0 : i32
    return %arg0, %c0_i32, %c0_i32_0 : i32, i32, i32
  }
}

</mosaic_0001>

<bundles_post_ra>
// kernel: tile.27
= control target key start
LH: loop header
LB: loop body
LE: loop exit
PB: predicated region body
PF: predicated region fallthrough
CT: control target
= control target key end

     0   :  { %s22_s0 = inlined_call_operand.vmem [shape: f32[8], index: 0, kind: input, shape index: {}]   ;;  %s23_s1 = inlined_call_operand.vmem [shape: f32[2,8], index: 1, kind: output, shape index: {}]  }
   0x1   :  { %v4_v0 = vld [vmem:[%s22_s0] ss:$0 sm:$0xff] }
   0x2   :  { %5 = vst [vmem:[%s23_s1] sm:$0x3] %v4_v0 }

// kernel: tile.28
= control target key start
LH: loop header
LB: loop body
LE: loop exit
PB: predicated region body
PF: predicated region fallthrough
CT: control target
= control target key end

     0   :  { %vm7_vm0 = vcmask 64512   ;;  %vm13_vm1 = vcmask 130112   ;;  %s39_s0 = inlined_call_operand.vmem [shape: f32[2,8], index: 0, kind: input, shape index: {}]   ;;  %s40_s1 = inlined_call_operand.vmem [shape: f32[16], index: 1, kind: output, shape index: {}]  }
   0x1   :  { %v4_v0 = vld [vmem:[%s39_s0] sm:$0x3]  ;;  %s22_s0 = smov 8  }
   0x2   :  { %5 = vst [vmem:[#allocation1] sm:$0x3] %v4_v0 }
   0x9   :  { %v10_v1 = vld [vmem:[#allocation1 + $0x1] sm:$0x1]   ;;  %v6_v2 = vld [vmem:[#allocation1] sm:$0x1]  }
   0xa   :  { %11 = vrot.lane.b32.xlu0 %v10_v1, %s22_s0  ;;  %8 = vst.msk [vmem:[#allocation0] sm:$0x1] %vm7_vm0, %v6_v2  }
  0x7c   :  { %v12_v3 = vpop.permute.xlu0 %11  }
  0x7d   :  { %14 = vst.msk [vmem:[#allocation0] sm:$0x1] %vm13_vm1, %v12_v3  }
  0x84   :  { %v18_v4 = vld [vmem:[#allocation0] sm:$0x1] }
  0x85   :  { %20 = vst [vmem:[%s40_s1] sm:$0x1] %v18_v4 }

// kernel: tile.37
= control target key start
LH: loop header
LB: loop body
LE: loop exit
PB: predicated region body
PF: predicated region fallthrough
CT: control target
= control target key end

     0   :  { %s22_s0 = inlined_call_operand.vmem [shape: f32[16], index: 0, kind: input, shape index: {}]   ;;  %s23_s1 = inlined_call_operand.vmem [shape: f32[4,16], index: 1, kind: output, shape index: {}]  }
   0x1   :  { %v4_v0 = vld [vmem:[%s22_s0] ss:$0 sm:$0xff] }
   0x2   :  { %5 = vst [vmem:[%s23_s1] sm:$0xf] %v4_v0 }

// kernel: tile.38
= control target key start
LH: loop header
LB: loop body
LE: loop exit
PB: predicated region body
PF: predicated region fallthrough
CT: control target
= control target key end

     0   :  { %vm7_vm0 = vcmask 130048   ;;  %s37_s8 = smov 16   ;;  %s38_s9 = smov 32   ;;  %vm13_vm1 = vcmask 523648   ;;  %vm19_vm2 = vcmask 392448   ;;  %vm25_vm3 = vcmask 261248   ;;  %s55_s0 = inlined_call_operand.vmem [shape: f32[4,16], index: 0, kind: input, shape index: {}]   ;;  %s56_s1 = inlined_call_operand.vmem [shape: f32[64], index: 1, kind: output, shape index: {}]  }
   0x1   :  { %v4_v0 = vld [vmem:[%s55_s0] sm:$0xf]  ;;  %s36_s0 = smov 48  }
   0x2   :  { %5 = vst [vmem:[#allocation1] sm:$0xf] %v4_v0 }
   0x9   :  { %v10_v1 = vld [vmem:[#allocation1 + $0x3] sm:$0x1]   ;;  %v22_v2 = vld [vmem:[#allocation1 + $0x1] sm:$0x1]   ;;  %v6_v3 = vld [vmem:[#allocation1] sm:$0x1]  }
   0xa   :  { %11 = vrot.lane.b32.xlu0 %v10_v1, %s36_s0  ;;  %23 = vrot.lane.b32.xlu1 %v22_v2, %s37_s8  ;;  %v16_v4 = vld [vmem:[#allocation1 + $0x2] sm:$0x1]   ;;  %8 = vst.msk [vmem:[#allocation0] sm:$0x1] %vm7_vm0, %v6_v3  }
   0xe   :  { %17 = vrot.lane.b32.xlu0 %v16_v4, %s38_s9 }
  0x7c   :  { %v12_v5 = vpop.permute.xlu0 %11   ;;  %v24_v6 = vpop.permute.xlu1 %23  }
  0x7d   :  { %14 = vst.msk [vmem:[#allocation0] sm:$0x1] %vm13_vm1, %v12_v5  }
  0x80   :  { %v18_v7 = vpop.permute.xlu0 %17  }
  0x81   :  { %20 = vst.msk [vmem:[#allocation0] sm:$0x1] %vm19_vm2, %v18_v7  }
  0x82   :  { %26 = vst.msk [vmem:[#allocation0] sm:$0x1] %vm25_vm3, %v24_v6  }
  0x89   :  { %v30_v8 = vld [vmem:[#allocation0] sm:$0x1] }
  0x8a   :  { %32 = vst [vmem:[%s56_s1] sm:$0x1] %v30_v8 }

// kernel: _lambda_.4
= control target key start
LH: loop header
LB: loop body
LE: loop exit
PB: predicated region body
PF: predicated region fallthrough
CT: control target
= control target key end

     0   :  { %s1181_s15 = smov 0   ;;  %s1248_s0 = inlined_call_operand.vmem [shape: f32[64,16], index: 0, kind: input, shape index: {}]   ;;  %s1249_s1 = inlined_call_operand.vmem [shape: f32[16,16], index: 1, kind: input, shape index: {}]   ;;  %s1250_s2 = inlined_call_operand.vmem [shape: f32[1,16], index: 2, kind: input, shape index: {}]   ;;  %s1251_s3 = inlined_call_operand.vmem [shape: f32[64,16], index: 3, kind: output, shape index: {0}]   ;;  %s1252_s4 = inlined_call_operand.vmem [shape: f32[2,2,16], index: 4, kind: output, shape index: {1}]  }
   0x1 LB: > { %s1187_s16 = sadd.s32 4294967295, %s1154_s15   ;;  %p979_p0 = scmp.ge.s32.totalorder %s1154_s15, 1  ;;  %s1154_s15 = sphi %s1181_s15, %s15_s15  }
   0x2   : > { %p166_p1 = scmp.lt.s32.totalorder %s1154_s15, 3 }
   0x4   : > { %p167_p2 = pnand %p979_p0, %p166_p1 }
   0x5   : > { %v216_v0 = vld [vmem:[%s1249_s1] sm:$0xff] (!%p167_p2)  ;;  %v217_v1 = vld [vmem:[%s1249_s1 + $0x8] sm:$0xff] (!%p167_p2)  ;;  %s980_s21 = sshll.u32 (!%p167_p2), %s1187_s16, 2  ;;  %vm225_vm0 = vcmask (!%p167_p2), 130048   ;;  %p208_p4 = scmp.lt.s32.totalorder (!%p167_p2), %s1187_s16, 1  ;;  %vm868_vm1 = vcmask (!%p167_p2), 122880  }
   0x6   : > { %170 = sbr.rel (%p167_p2) target bundleno = 326 (0x146), region = 32  ;;  %v239_v2 = vand.u32 (!%p167_p2), 4294901760, %v216_v0  ;;  %v242_v3 = vand.u32 (!%p167_p2), 4294901760, %v217_v1  ;;  %p197_p3 = scmp.lt.s32.totalorder (!%p167_p2), %s980_s21, 7  ;;  %v985_v46 = vld [vmem:[%s1250_s2] ss:$0 sm:$0xff] (!%p167_p2) }
   0x8   : > { %v1198_v4 = vpack.c.bf16 (!%p167_p2), %v242_v3, %v239_v2  ;;  %v347_v5 = vsub.f32 (!%p167_p2), %v216_v0, %v239_v2  ;;  %v354_v6 = vsub.f32 (!%p167_p2), %v217_v1, %v242_v3 }
   0xa   : > { %1097 = vmatprep.subr.bf16.mxu0 (!%p167_p2), %v1198_v4  ;;  %1085 = vmatprep.subr.bf16.mxu1 (!%p167_p2), %v1198_v4  ;;  %v348_v7 = vand.u32 (!%p167_p2), 4294901760, %v347_v5  ;;  %v355_v8 = vand.u32 (!%p167_p2), 4294901760, %v354_v6  ;;  %v1092_v42 = vpack.c.bf16 (!%p167_p2), %v354_v6, %v347_v5 }
   0xb   : > { %1099 = vmatpush3.bf16.msra.mxu0 (!%p167_p2), %v1198_v4  ;;  %1087 = vmatpush3.bf16.msra.mxu1 (!%p167_p2), %v1198_v4 }
   0xc   : > { %v349_v11 = vsub.f32 (!%p167_p2), %v347_v5, %v348_v7  ;;  %v356_v12 = vsub.f32 (!%p167_p2), %v354_v6, %v355_v8  ;;  %v1100_v14 = vpack.c.bf16 (!%p167_p2), %v355_v8, %v348_v7 }
   0xd   : > { %s1254_s21 = smov (!%p197_p3, %s980_s21), 7  ;;  %s1256_s16 = smov (!%p208_p4, %s1187_s16), 1 }
   0xe   : > { %s981_s22 = sshll.u32 %s1254_s21, 3  ;;  %v350_v21 = vand.u32 4294901760, %v349_v11  ;;  %v357_v22 = vand.u32 4294901760, %v356_v12  ;;  %1101 = vmatprep.subr.bf16.mxu0 %v1100_v14  ;;  %s984_s5 = sshll.u32 %s1256_s16, 1 }
   0xf   : > { %s200_s25 = scalar_lea.vmem %s1248_s0, %s981_s22  ;;  %s206_s30 = scalar_lea.vmem %s1251_s3, %s981_s22 }
  0x10   : > { %v212_v9 = vld [vmem:[%s200_s25] sm:$0xff]  ;;  %v213_v10 = vld [vmem:[%s200_s25 + $0x8] sm:$0xff]  ;;  %v214_v13 = vld [vmem:[%s200_s25 + $0x10] sm:$0xff]  ;;  %v1088_v27 = vpack.c.bf16 %v357_v22, %v350_v21  ;;  %s211_s8 = scalar_lea.vmem %s1252_s4, %s984_s5 }
  0x11   : > { %v227_v15 = vsel %vm225_vm0, %v212_v9, 0  ;;  %v230_v16 = vsel %vm225_vm0, %v213_v10, 0  ;;  %v233_v17 = vsel %vm225_vm0, %v214_v13, 0  ;;  %v215_v18 = vld [vmem:[%s200_s25 + $0x18] sm:$0xff] }
  0x12   : > { %v305_v19 = vand.u32 4294901760, %v227_v15  ;;  %v315_v20 = vand.u32 4294901760, %v230_v16  ;;  %v325_v23 = vand.u32 4294901760, %v233_v17  ;;  %v236_v24 = vsel %vm225_vm0, %v215_v18, 0  ;;  %1089 = vmatprep.subr.bf16.mxu1 %v1088_v27 }
  0x13   : > { %v335_v28 = vand.u32 4294901760, %v236_v24 }
  0x14   : > { %v306_v25 = vsub.f32 %v227_v15, %v305_v19  ;;  %v316_v26 = vsub.f32 %v230_v16, %v315_v20  ;;  %v326_v29 = vsub.f32 %v233_v17, %v325_v23 }
  0x15   : > { %v336_v32 = vsub.f32 %v236_v24, %v335_v28 }
  0x16   : > { %v307_v30 = vand.u32 4294901760, %v306_v25  ;;  %v317_v31 = vand.u32 4294901760, %v316_v26  ;;  %v327_v33 = vand.u32 4294901760, %v326_v29 }
  0x17   : > { %v337_v36 = vand.u32 4294901760, %v336_v32 }
  0x18   : > { %1058 = vmatprep.mubr.f32.mxu0 %v307_v30  ;;  %v308_v34 = vsub.f32 %v306_v25, %v307_v30  ;;  %v318_v35 = vsub.f32 %v316_v26, %v317_v31  ;;  %v328_v37 = vsub.f32 %v326_v29, %v327_v33 }
  0x19   : > { %1059 = vmatmul.mubr.f32.vlgmr.msra.gmra.mrb[0].mxu0 %v317_v31  ;;  %v338_v40 = vsub.f32 %v336_v32, %v337_v36 }
  0x1a   : > { %v309_v38 = vand.u32 4294901760, %v308_v34  ;;  %1061 = vmatprep.mubr.f32.mxu0 %v327_v33  ;;  %v319_v39 = vand.u32 4294901760, %v318_v35  ;;  %1103 = vmatpush3.bf16.msra.mxu0 %v1100_v14  ;;  %v329_v41 = vand.u32 4294901760, %v328_v37 }
  0x1b   : > { %1105 = vmatprep.subr.bf16.mxu0 %v1198_v4  ;;  %v339_v43 = vand.u32 4294901760, %v338_v40 }
  0x1c   : > { %1028 = vmatprep.mubr.f32.mxu1 %v309_v38 }
  0x1d   : > { %1029 = vmatmul.mubr.f32.vlgmr.msra.gmra.mrb[0].mxu1 %v319_v39  ;;  %1062 = vmatmul.mubr.f32.gmra.mrb[2].mxu0 %v337_v36 }
  0x1e   : > { %1091 = vmatpush3.bf16.msra.mxu1 %v1088_v27  ;;  %1031 = vmatprep.mubr.f32.mxu1 %v329_v41 }
  0x1f   : > { %1068 = vmatprep.mubr.f32.mxu0 %v305_v19  ;;  %1093 = vmatprep.subr.bf16.mxu1 %v1092_v42 }
  0x21   : > { %1032 = vmatmul.mubr.f32.gmra.mrb[2].mxu1 %v339_v43  ;;  %1069 = vmatmul.mubr.f32.vlgmr.msra.gmra.mrb[0].mxu0 %v315_v20 }
  0x22   : > { %1038 = vmatprep.mubr.f32.mxu1 %v305_v19  ;;  %1071 = vmatprep.mubr.f32.mxu0 %v325_v23 }
  0x23   : > { %1107 = vmatpush3.bf16.msra.mxu0 %v1198_v4 }
  0x25   : > { %1039 = vmatmul.mubr.f32.vlgmr.msra.gmra.mrb[0].mxu1 %v315_v20  ;;  %1072 = vmatmul.mubr.f32.gmra.mrb[2].mxu0 %v335_v28 }
  0x26   : > { %1095 = vmatpush3.bf16.msra.mxu1 %v1092_v42  ;;  %1041 = vmatprep.mubr.f32.mxu1 %v325_v23 }
  0x27   : > { %1078 = vmatprep.mubr.f32.mxu0 %v305_v19 }
  0x29   : > { %1042 = vmatmul.mubr.f32.gmra.mrb[2].mxu1 %v335_v28  ;;  %1079 = vmatmul.mubr.f32.vlgmr.msra.gmra.mrb[0].mxu0 %v315_v20 }
  0x2a   : > { %1048 = vmatprep.mubr.f32.mxu1 %v306_v25  ;;  %1081 = vmatprep.mubr.f32.mxu0 %v325_v23 }
  0x2d   : > { %1049 = vmatmul.mubr.f32.vlgmr.msra.gmra.mrb[0].mxu1 %v316_v26  ;;  %1082 = vmatmul.mubr.f32.gmra.mrb[2].mxu0 %v335_v28 }
  0x2e   : > { %1051 = vmatprep.mubr.f32.mxu1 %v326_v29 }
  0x31   : > { %1052 = vmatmul.mubr.f32.gmra.mrb[2].mxu1 %v336_v32 }
  0xfc   : > { %v1080_v44 = vpop.f32.mrb[0].mxu0 }
  0xfd   : > { %v804_v45 = vpop.f32.mrb[1].mxu0 }
 0x100   : > { %v1050_v47 = vpop.f32.mrb[0].mxu1  ;;  %v1083_v48 = vpop.f32.mrb[2].mxu0 }
 0x101   : > { %v1108_v49 = vadd.f32 %v1050_v47, %v985_v46  ;;  %v516_v50 = vpop.f32.mrb[1].mxu1  ;;  %v816_v51 = vpop.f32.mrb[3].mxu0 }
 0x102   : > { %v1110_v52 = vadd.f32 %v985_v46, %v516_v50 }
 0x103   : > { %v1109_v53 = vadd.f32 %v1108_v49, %v1080_v44 }
 0x104   : > { %v1111_v54 = vadd.f32 %v1110_v52, %v804_v45  ;;  %v1053_v55 = vpop.f32.mrb[2].mxu1 }
 0x105   : > { %v831_v56 = vmul.f32 0.70710677, %v1109_v53  ;;  %v1112_v57 = vadd.f32 %v1053_v55, %v985_v46  ;;  %v530_v58 = vpop.f32.mrb[3].mxu1  ;;  %v827_v3 = vmul.f32 0.5, %v1109_v53 }
 0x106   : > { %v830_v59 = vmul.f32 0.70710677, %v1111_v54  ;;  %v1114_v60 = vadd.f32 %v985_v46, %v530_v58  ;;  %v826_v5 = vmul.f32 0.5, %v1111_v54 }
 0x107   : > { %1140 = verf.f32 %v831_v56  ;;  %v1113_v61 = vadd.f32 %v1112_v57, %v1083_v48 }
 0x108   : > { %1142 = verf.f32 %v830_v59  ;;  %v1115_v62 = vadd.f32 %v1114_v60, %v816_v51 }
 0x109   : > { %v833_v63 = vmul.f32 0.70710677, %v1113_v61  ;;  %v829_v14 = vmul.f32 0.5, %v1113_v61 }
 0x10a   : > { %v832_v0 = vmul.f32 0.70710677, %v1115_v62  ;;  %v828_v15 = vmul.f32 0.5, %v1115_v62 }
 0x10b   : > { %1144 = verf.f32 %v833_v63 }
 0x10c   : > { %1146 = verf.f32 %v832_v0 }
 0x111   : > { %v1141_v1 = vpop.eup %1140 }
 0x112   : > { %v1143_v2 = vpop.eup %1142  ;;  %v839_v4 = vadd.f32 1.0, %v1141_v1 }
 0x113   : > { %v838_v6 = vadd.f32 1.0, %v1143_v2 }
 0x114   : > { %v843_v7 = vmul.f32 %v839_v4, %v827_v3 }
 0x115   : > { %v1145_v8 = vpop.eup %1144  ;;  %v842_v9 = vmul.f32 %v838_v6, %v826_v5 }
 0x116   : > { %v1147_v10 = vpop.eup %1146  ;;  %v851_v11 = vsel %vm225_vm0, %v843_v7, 0.0  ;;  %v841_v12 = vadd.f32 1.0, %v1145_v8  ;;  %847 = vst.msk [vmem:[%s206_s30 + $0x8] sm:$0xff] %vm225_vm0, %v843_v7 }
 0x117   : > { %846 = vst.msk [vmem:[%s206_s30] sm:$0xff] %vm225_vm0, %v842_v9  ;;  %v850_v13 = vsel %vm225_vm0, %v842_v9, 0.0  ;;  %v840_v16 = vadd.f32 1.0, %v1147_v10 }
 0x118   : > { %v852_v17 = vadd.f32 %v851_v11, %v850_v13  ;;  %v845_v18 = vmul.f32 %v841_v12, %v829_v14 }
 0x119   : > { %v844_v19 = vmul.f32 %v840_v16, %v828_v15 }
 0x11a   : > { %849 = vst.msk [vmem:[%s206_s30 + $0x18] sm:$0xff] %vm225_vm0, %v845_v18  ;;  %v855_v22 = vsel %vm225_vm0, %v845_v18, 0.0 }
 0x11b   : > { %848 = vst.msk [vmem:[%s206_s30 + $0x10] sm:$0xff] %vm225_vm0, %v844_v19  ;;  %v853_v20 = vsel %vm225_vm0, %v844_v19, 0.0 }
 0x11c   : > { %v854_v21 = vadd.f32 %v853_v20, %v852_v17 }
 0x11e   : > { %v856_v23 = vadd.f32 %v855_v22, %v854_v21 }
 0x120   : > { %v857_v24 = vrot.slane %v856_v23, 4 }
 0x122   : > { %v858_v25 = vadd.f32 %v857_v24, %v856_v23 }
 0x124   : > { %v859_v26 = vrot.slane %v858_v25, 2 }
 0x126   : > { %v860_v27 = vadd.f32 %v859_v26, %v858_v25 }
 0x128   : > { %v861_v28 = vrot.slane %v860_v27, 1 }
 0x12a   : > { %v862_v29 = vadd.f32 %v861_v28, %v860_v27 }
 0x12c   : > { %v863_v30 = vmul.f32 0.03125, %v862_v29  ;;  %869 = vst.msk [vmem:[%s211_s8] sm:$0x1] %vm868_vm1, %v862_v29 }
 0x12e   : > { %v864_v31 = vsub.f32 %v842_v9, %v863_v30  ;;  %v865_v32 = vsub.f32 %v843_v7, %v863_v30  ;;  %v866_v33 = vsub.f32 %v844_v19, %v863_v30  ;;  %v867_v34 = vsub.f32 %v845_v18, %v863_v30 }
 0x130   : > { %v870_v35 = vmul.f32 %v864_v31, %v864_v31  ;;  %v871_v36 = vmul.f32 %v865_v32, %v865_v32  ;;  %v872_v37 = vmul.f32 %v866_v33, %v866_v33  ;;  %v873_v38 = vmul.f32 %v867_v34, %v867_v34 }
 0x132   : > { %v874_v39 = vsel %vm225_vm0, %v870_v35, 0.0  ;;  %v875_v40 = vsel %vm225_vm0, %v871_v36, 0.0  ;;  %v877_v42 = vsel %vm225_vm0, %v872_v37, 0.0  ;;  %v879_v44 = vsel %vm225_vm0, %v873_v38, 0.0 }
 0x133   : > { %v876_v41 = vadd.f32 %v875_v40, %v874_v39 }
 0x135   : > { %v878_v43 = vadd.f32 %v877_v42, %v876_v41 }
 0x137   : > { %v880_v45 = vadd.f32 %v879_v44, %v878_v43 }
 0x139   : > { %v881_v46 = vrot.slane %v880_v45, 4 }
 0x13b   : > { %v882_v47 = vadd.f32 %v881_v46, %v880_v45 }
 0x13d   : > { %v883_v48 = vrot.slane %v882_v47, 2 }
 0x13f   : > { %v884_v49 = vadd.f32 %v883_v48, %v882_v47 }
 0x141   : > { %v885_v50 = vrot.slane %v884_v49, 1 }
 0x143   : > { %v886_v51 = vadd.f32 %v885_v50, %v884_v49 }
 0x145   : > { %887 = vst.msk [vmem:[%s211_s8 + $0x1] sm:$0x1] %vm868_vm1, %v886_v51 }
 0x146 PF: > { %s15_s15 = sadd.s32 1, %s1154_s15  }
 0x147   : > { %p12_p5 = scmp.ge.s32.totalorder %s15_s15, 4  }
 0x149   :  { %14 = sbr.rel (!%p12_p5) target bundleno = 1 (0x1), region = 74 }

// kernel: _lambda_.3
= control target key start
LH: loop header
LB: loop body
LE: loop exit
PB: predicated region body
PF: predicated region fallthrough
CT: control target
= control target key end

     0   :  { %s1510_s15 = smov 0   ;;  %s1705_s0 = inlined_call_operand.vmem [shape: f32[128,16], index: 0, kind: input, shape index: {}]   ;;  %s1706_s1 = inlined_call_operand.vmem [shape: f32[16,8], index: 1, kind: input, shape index: {}]   ;;  %s1707_s2 = inlined_call_operand.vmem [shape: f32[1,8], index: 2, kind: input, shape index: {}]   ;;  %s1708_s3 = inlined_call_operand.vmem [shape: f32[128,8], index: 3, kind: output, shape index: {0}]   ;;  %s1709_s4 = inlined_call_operand.vmem [shape: f32[2,2,8], index: 4, kind: output, shape index: {1}]  }
   0x1 LB: > { %s1516_s16 = sadd.s32 4294967295, %s1483_s15   ;;  %p1216_p0 = scmp.ge.s32.totalorder %s1483_s15, 1  ;;  %s1483_s15 = sphi %s1510_s15, %s15_s15  }
   0x2   : > { %p166_p1 = scmp.lt.s32.totalorder %s1483_s15, 3 }
   0x4   : > { %p167_p2 = pnand %p1216_p0, %p166_p1 }
   0x5   : > { %v220_v0 = vld [vmem:[%s1706_s1] sm:$0xff] (!%p167_p2)  ;;  %v221_v1 = vld [vmem:[%s1706_s1 + $0x8] sm:$0xff] (!%p167_p2)  ;;  %s1217_s21 = sshll.u32 (!%p167_p2), %s1516_s16, 3  ;;  %vm229_vm0 = vcmask (!%p167_p2), 130048   ;;  %vm1054_vm1 = vcmask (!%p167_p2), 64512   ;;  %p208_p4 = scmp.lt.s32.totalorder (!%p167_p2), %s1516_s16, 1 }
   0x6   : > { %170 = sbr.rel (%p167_p2) target bundleno = 358 (0x166), region = 32  ;;  %v255_v2 = vand.u32 (!%p167_p2), 4294901760, %v220_v0  ;;  %v258_v3 = vand.u32 (!%p167_p2), 4294901760, %v221_v1  ;;  %p197_p3 = scmp.lt.s32.totalorder (!%p167_p2), %s1217_s21, 15  ;;  %vm1093_vm2 = vcmask (!%p167_p2), 57344  }
   0x8   : > { %v1527_v4 = vpack.c.bf16 (!%p167_p2), %v258_v3, %v255_v2  ;;  %v1531_v5 = vsub.f32 (!%p167_p2), %v220_v0, %v255_v2  ;;  %v1533_v6 = vsub.f32 (!%p167_p2), %v221_v1, %v258_v3 }
   0xa   : > { %1394 = vmatprep.subr.bf16.mxu0 (!%p167_p2), %v1527_v4  ;;  %1382 = vmatprep.subr.bf16.mxu1 (!%p167_p2), %v1527_v4  ;;  %v404_v7 = vand.u32 (!%p167_p2), 4294901760, %v1531_v5  ;;  %v411_v8 = vand.u32 (!%p167_p2), 4294901760, %v1533_v6  ;;  %v1389_v62 = vpack.c.bf16 (!%p167_p2), %v1533_v6, %v1531_v5 }
   0xb   : > { %1396 = vmatpush3.bf16.msra.mxu0 (!%p167_p2), %v1527_v4  ;;  %1384 = vmatpush3.bf16.msra.mxu1 (!%p167_p2), %v1527_v4 }
   0xc   : > { %v405_v11 = vsub.f32 (!%p167_p2), %v1531_v5, %v404_v7  ;;  %v412_v12 = vsub.f32 (!%p167_p2), %v1533_v6, %v411_v8  ;;  %v1397_v14 = vpack.c.bf16 (!%p167_p2), %v411_v8, %v404_v7 }
   0xd   : > { %s1711_s21 = smov (!%p197_p3, %s1217_s21), 15  ;;  %s1713_s16 = smov (!%p208_p4, %s1516_s16), 1 }
   0xe   : > { %s1218_s22 = sshll.u32 %s1711_s21, 3  ;;  %v406_v23 = vand.u32 4294901760, %v405_v11  ;;  %v413_v24 = vand.u32 4294901760, %v412_v12  ;;  %1398 = vmatprep.subr.bf16.mxu0 %v1397_v14  ;;  %s1221_s5 = sshll.u32 %s1713_s16, 1 }
   0xf   : > { %s200_s25 = scalar_lea.vmem %s1705_s0, %s1218_s22  ;;  %s1652_s30 = scalar_lea.vmem %s1708_s3, %s1218_s22 }
  0x10   : > { %v212_v9 = vld [vmem:[%s200_s25] sm:$0xff]  ;;  %v213_v10 = vld [vmem:[%s200_s25 + $0x8] sm:$0xff]  ;;  %v214_v13 = vld [vmem:[%s200_s25 + $0x10] sm:$0xff]  ;;  %v1385_v32 = vpack.c.bf16 %v413_v24, %v406_v23  ;;  %s1687_s8 = scalar_lea.vmem %s1709_s4, %s1221_s5 }
  0x11   : > { %v231_v15 = vsel %vm229_vm0, %v212_v9, 0  ;;  %v234_v16 = vsel %vm229_vm0, %v213_v10, 0  ;;  %v237_v17 = vsel %vm229_vm0, %v214_v13, 0  ;;  %v215_v18 = vld [vmem:[%s200_s25 + $0x18] sm:$0xff]  ;;  %v216_v19 = vld [vmem:[%s200_s25 + $0x20] sm:$0xff]  ;;  %v217_v20 = vld [vmem:[%s200_s25 + $0x28] sm:$0xff] }
  0x12   : > { %v1552_v21 = vand.u32 4294901760, %v231_v15  ;;  %v1554_v22 = vand.u32 4294901760, %v234_v16  ;;  %v218_v25 = vld [vmem:[%s200_s25 + $0x30] sm:$0xff]  ;;  %v1556_v26 = vand.u32 4294901760, %v237_v17  ;;  %v240_v27 = vsel %vm229_vm0, %v215_v18, 0  ;;  %v219_v34 = vld [vmem:[%s200_s25 + $0x38] sm:$0xff]  ;;  %1386 = vmatprep.subr.bf16.mxu1 %v1385_v32 }
  0x13   : > { %v243_v28 = vsel %vm229_vm0, %v216_v19, 0  ;;  %v246_v29 = vsel %vm229_vm0, %v217_v20, 0  ;;  %v1567_v33 = vand.u32 4294901760, %v240_v27  ;;  %v249_v38 = vsel %vm229_vm0, %v218_v25, 0  ;;  %v1222_v10 = vld [vmem:[%s1707_s2] ss:$0 sm:$0xff] }
  0x14   : > { %v1562_v30 = vsub.f32 %v231_v15, %v1552_v21  ;;  %v1565_v31 = vsub.f32 %v234_v16, %v1554_v22  ;;  %v1570_v35 = vsub.f32 %v237_v17, %v1556_v26  ;;  %v1572_v36 = vand.u32 4294901760, %v243_v28 }
  0x15   : > { %v1574_v37 = vand.u32 4294901760, %v246_v29  ;;  %v1580_v41 = vsub.f32 %v240_v27, %v1567_v33  ;;  %v1582_v42 = vand.u32 4294901760, %v249_v38  ;;  %v252_v46 = vsel %vm229_vm0, %v219_v34, 0 }
  0x16   : > { %v323_v39 = vand.u32 4294901760, %v1562_v30  ;;  %v333_v40 = vand.u32 4294901760, %v1565_v31  ;;  %v343_v43 = vand.u32 4294901760, %v1570_v35  ;;  %v1586_v44 = vsub.f32 %v243_v28, %v1572_v36 }
  0x17   : > { %v1589_v45 = vsub.f32 %v246_v29, %v1574_v37  ;;  %v353_v49 = vand.u32 4294901760, %v1580_v41  ;;  %v1596_v50 = vsub.f32 %v249_v38, %v1582_v42  ;;  %v1601_v54 = vand.u32 4294901760, %v252_v46 }
  0x18   : > { %1337 = vmatprep.mubr.f32.mxu0 %v323_v39  ;;  %v324_v47 = vsub.f32 %v1562_v30, %v323_v39  ;;  %v334_v48 = vsub.f32 %v1565_v31, %v333_v40  ;;  %v344_v51 = vsub.f32 %v1570_v35, %v343_v43  ;;  %v363_v52 = vand.u32 4294901760, %v1586_v44 }
  0x19   : > { %1338 = vmatmul.mubr.f32.vlgmr.msra.gmra.mrb[0].mxu0 %v333_v40  ;;  %v373_v53 = vand.u32 4294901760, %v1589_v45  ;;  %v354_v57 = vsub.f32 %v1580_v41, %v353_v49  ;;  %v383_v58 = vand.u32 4294901760, %v1596_v50  ;;  %v392_v61 = vsub.f32 %v252_v46, %v1601_v54 }
  0x1a   : > { %v325_v55 = vand.u32 4294901760, %v324_v47  ;;  %1340 = vmatprep.mubr.f32.mxu0 %v343_v43  ;;  %v335_v56 = vand.u32 4294901760, %v334_v48  ;;  %1400 = vmatpush3.bf16.msra.mxu0 %v1397_v14  ;;  %v345_v59 = vand.u32 4294901760, %v344_v51  ;;  %v364_v60 = vsub.f32 %v1586_v44, %v363_v52 }
  0x1b   : > { %1402 = vmatprep.subr.bf16.mxu0 %v1527_v4  ;;  %v355_v63 = vand.u32 4294901760, %v354_v57  ;;  %v374_v0 = vsub.f32 %v1589_v45, %v373_v53  ;;  %v393_v1 = vand.u32 4294901760, %v392_v61  ;;  %v384_v3 = vsub.f32 %v1596_v50, %v383_v58 }
  0x1c   : > { %1289 = vmatprep.mubr.f32.mxu1 %v325_v55  ;;  %v365_v2 = vand.u32 4294901760, %v364_v60 }
  0x1d   : > { %1290 = vmatmul.mubr.f32.vlgmr.msra.gmra.mrb[0].mxu1 %v335_v56  ;;  %1341 = vmatmul.mubr.f32.gmra.mrb[2].mxu0 %v353_v49  ;;  %v375_v7 = vand.u32 4294901760, %v374_v0  ;;  %v394_v5 = vsub.f32 %v392_v61, %v393_v1  ;;  %v385_v6 = vand.u32 4294901760, %v384_v3 }
  0x1e   : > { %1388 = vmatpush3.bf16.msra.mxu1 %v1385_v32  ;;  %1292 = vmatprep.mubr.f32.mxu1 %v345_v59 }
  0x1f   : > { %1343 = vmatprep.mubr.f32.mxu0 %v363_v52  ;;  %1390 = vmatprep.subr.bf16.mxu1 %v1389_v62  ;;  %v395_v8 = vand.u32 4294901760, %v394_v5 }
  0x21   : > { %1293 = vmatmul.mubr.f32.gmra.mrb[2].mxu1 %v355_v63  ;;  %1344 = vmatmul.mubr.f32.gmra.mrb[4].mxu0 %v373_v53 }
  0x22   : > { %1295 = vmatprep.mubr.f32.mxu1 %v365_v2  ;;  %1346 = vmatprep.mubr.f32.mxu0 %v383_v58 }
  0x25   : > { %1296 = vmatmul.mubr.f32.gmra.mrb[4].mxu1 %v375_v7  ;;  %1347 = vmatmul.mubr.f32.gmra.mrb[6].mxu0 %v393_v1 }
  0x26   : > { %1298 = vmatprep.mubr.f32.mxu1 %v385_v6  ;;  %1353 = vmatprep.mubr.f32.mxu0 %v1552_v21 }
  0x29   : > { %1299 = vmatmul.mubr.f32.gmra.mrb[6].mxu1 %v395_v8  ;;  %1354 = vmatmul.mubr.f32.vlgmr.msra.gmra.mrb[0].mxu0 %v1554_v22 }
  0x2a   : > { %1305 = vmatprep.mubr.f32.mxu1 %v1552_v21  ;;  %1356 = vmatprep.mubr.f32.mxu0 %v1556_v26 }
  0x2b   : > { %1404 = vmatpush3.bf16.msra.mxu0 %v1527_v4 }
  0x2d   : > { %1306 = vmatmul.mubr.f32.vlgmr.msra.gmra.mrb[0].mxu1 %v1554_v22  ;;  %1357 = vmatmul.mubr.f32.gmra.mrb[2].mxu0 %v1567_v33 }
  0x2e   : > { %1392 = vmatpush3.bf16.msra.mxu1 %v1389_v62  ;;  %1308 = vmatprep.mubr.f32.mxu1 %v1556_v26 }
  0x2f   : > { %1359 = vmatprep.mubr.f32.mxu0 %v1572_v36 }
  0x31   : > { %1309 = vmatmul.mubr.f32.gmra.mrb[2].mxu1 %v1567_v33  ;;  %1360 = vmatmul.mubr.f32.gmra.mrb[4].mxu0 %v1574_v37 }
  0x32   : > { %1311 = vmatprep.mubr.f32.mxu1 %v1572_v36  ;;  %1362 = vmatprep.mubr.f32.mxu0 %v1582_v42 }
  0x35   : > { %1312 = vmatmul.mubr.f32.gmra.mrb[4].mxu1 %v1574_v37  ;;  %1363 = vmatmul.mubr.f32.gmra.mrb[6].mxu0 %v1601_v54 }
  0x36   : > { %1314 = vmatprep.mubr.f32.mxu1 %v1582_v42  ;;  %1369 = vmatprep.mubr.f32.mxu0 %v1552_v21 }
  0x39   : > { %1315 = vmatmul.mubr.f32.gmra.mrb[6].mxu1 %v1601_v54  ;;  %1370 = vmatmul.mubr.f32.vlgmr.msra.gmra.mrb[0].mxu0 %v1554_v22 }
  0x3a   : > { %1321 = vmatprep.mubr.f32.mxu1 %v1562_v30  ;;  %1372 = vmatprep.mubr.f32.mxu0 %v1556_v26 }
  0x3d   : > { %1322 = vmatmul.mubr.f32.vlgmr.msra.gmra.mrb[0].mxu1 %v1565_v31  ;;  %1373 = vmatmul.mubr.f32.gmra.mrb[2].mxu0 %v1567_v33 }
  0x3e   : > { %1324 = vmatprep.mubr.f32.mxu1 %v1570_v35  ;;  %1375 = vmatprep.mubr.f32.mxu0 %v1572_v36 }
  0x41   : > { %1325 = vmatmul.mubr.f32.gmra.mrb[2].mxu1 %v1580_v41  ;;  %1376 = vmatmul.mubr.f32.gmra.mrb[4].mxu0 %v1574_v37 }
  0x42   : > { %1327 = vmatprep.mubr.f32.mxu1 %v1586_v44  ;;  %1378 = vmatprep.mubr.f32.mxu0 %v1582_v42 }
  0x45   : > { %1328 = vmatmul.mubr.f32.gmra.mrb[4].mxu1 %v1589_v45  ;;  %1379 = vmatmul.mubr.f32.gmra.mrb[6].mxu0 %v1601_v54 }
  0x46   : > { %1330 = vmatprep.mubr.f32.mxu1 %v1596_v50 }
  0x49   : > { %1331 = vmatmul.mubr.f32.gmra.mrb[6].mxu1 %v392_v61 }
 0x10c   : > { %v1371_v4 = vpop.f32.mrb[0].mxu0 }
 0x10d   : > { %v968_v9 = vpop.f32.mrb[1].mxu0 }
 0x110   : > { %v1323_v11 = vpop.f32.mrb[0].mxu1  ;;  %v1374_v12 = vpop.f32.mrb[2].mxu0 }
 0x111   : > { %v1405_v13 = vadd.f32 %v1323_v11, %v1222_v10  ;;  %v596_v14 = vpop.f32.mrb[1].mxu1  ;;  %v980_v15 = vpop.f32.mrb[3].mxu0 }
 0x112   : > { %v1407_v16 = vadd.f32 %v1222_v10, %v596_v14 }
 0x113   : > { %v1406_v17 = vadd.f32 %v1405_v13, %v1371_v4 }
 0x114   : > { %v1408_v18 = vadd.f32 %v1407_v16, %v968_v9  ;;  %v1326_v19 = vpop.f32.mrb[2].mxu1  ;;  %v1377_v20 = vpop.f32.mrb[4].mxu0 }
 0x115   : > { %v1023_v21 = vmul.f32 0.70710677, %v1406_v17  ;;  %v1409_v22 = vadd.f32 %v1326_v19, %v1222_v10  ;;  %v610_v23 = vpop.f32.mrb[3].mxu1  ;;  %v992_v24 = vpop.f32.mrb[5].mxu0  ;;  %v1015_v50 = vmul.f32 0.5, %v1406_v17 }
 0x116   : > { %v1022_v25 = vmul.f32 0.70710677, %v1408_v18  ;;  %v1411_v26 = vadd.f32 %v1222_v10, %v610_v23  ;;  %v1014_v53 = vmul.f32 0.5, %v1408_v18 }
 0x117   : > { %1461 = verf.f32 %v1023_v21  ;;  %v1410_v27 = vadd.f32 %v1409_v22, %v1374_v12 }
 0x118   : > { %1463 = verf.f32 %v1022_v25  ;;  %v1412_v28 = vadd.f32 %v1411_v26, %v980_v15  ;;  %v1329_v29 = vpop.f32.mrb[4].mxu1  ;;  %v1380_v30 = vpop.f32.mrb[6].mxu0 }
 0x119   : > { %v1025_v31 = vmul.f32 0.70710677, %v1410_v27  ;;  %v1413_v32 = vadd.f32 %v1329_v29, %v1222_v10  ;;  %v624_v33 = vpop.f32.mrb[5].mxu1  ;;  %v1004_v34 = vpop.f32.mrb[7].mxu0  ;;  %v1017_v60 = vmul.f32 0.5, %v1410_v27 }
 0x11a   : > { %v1024_v35 = vmul.f32 0.70710677, %v1412_v28  ;;  %v1415_v36 = vadd.f32 %v1222_v10, %v624_v33  ;;  %v1016_v63 = vmul.f32 0.5, %v1412_v28 }
 0x11b   : > { %1465 = verf.f32 %v1025_v31  ;;  %v1414_v37 = vadd.f32 %v1413_v32, %v1377_v20 }
 0x11c   : > { %1467 = verf.f32 %v1024_v35  ;;  %v1416_v38 = vadd.f32 %v1415_v36, %v992_v24  ;;  %v1332_v39 = vpop.f32.mrb[6].mxu1 }
 0x11d   : > { %v1027_v40 = vmul.f32 0.70710677, %v1414_v37  ;;  %v1417_v41 = vadd.f32 %v1332_v39, %v1222_v10  ;;  %v638_v42 = vpop.f32.mrb[7].mxu1  ;;  %v1019_v6 = vmul.f32 0.5, %v1414_v37 }
 0x11e   : > { %v1026_v43 = vmul.f32 0.70710677, %v1416_v38  ;;  %v1419_v44 = vadd.f32 %v1222_v10, %v638_v42  ;;  %v1018_v9 = vmul.f32 0.5, %v1416_v38 }
 0x11f   : > { %1469 = verf.f32 %v1027_v40  ;;  %v1418_v45 = vadd.f32 %v1417_v41, %v1380_v30 }
 0x120   : > { %1471 = verf.f32 %v1026_v43  ;;  %v1420_v46 = vadd.f32 %v1419_v44, %v1004_v34 }
 0x121   : > { %v1462_v47 = vpop.eup %1461  ;;  %v1029_v48 = vmul.f32 0.70710677, %v1418_v45  ;;  %v1021_v18 = vmul.f32 0.5, %v1418_v45 }
 0x122   : > { %v1464_v49 = vpop.eup %1463  ;;  %v1039_v51 = vadd.f32 1.0, %v1462_v47  ;;  %v1028_v52 = vmul.f32 0.70710677, %v1420_v46  ;;  %v1020_v21 = vmul.f32 0.5, %v1420_v46 }
 0x123   : > { %v1038_v54 = vadd.f32 1.0, %v1464_v49  ;;  %1473 = verf.f32 %v1029_v48 }
 0x124   : > { %v1654_v55 = vmul.f32 %v1039_v51, %v1015_v50  ;;  %1475 = verf.f32 %v1028_v52 }
 0x125   : > { %v1466_v56 = vpop.eup %1465  ;;  %v1046_v57 = vmul.f32 %v1038_v54, %v1014_v53 }
 0x126   : > { %v1468_v58 = vpop.eup %1467  ;;  %1056 = vst.msk [vmem:[%s1652_s30 + $0x8] sm:$0xff] %vm1054_vm1, %v1654_v55  ;;  %v1064_v59 = vsel %vm1054_vm1, %v1654_v55, 0.0  ;;  %v1041_v61 = vadd.f32 1.0, %v1466_v56 }
 0x127   : > { %1055 = vst.msk [vmem:[%s1652_s30] sm:$0xff] %vm1054_vm1, %v1046_v57  ;;  %v1063_v62 = vsel %vm1054_vm1, %v1046_v57, 0.0  ;;  %v1040_v0 = vadd.f32 1.0, %v1468_v58 }
 0x128   : > { %v1065_v1 = vadd.f32 %v1064_v59, %v1063_v62  ;;  %v1049_v2 = vmul.f32 %v1041_v61, %v1017_v60 }
 0x129   : > { %v1470_v3 = vpop.eup %1469  ;;  %v1048_v7 = vmul.f32 %v1040_v0, %v1016_v63 }
 0x12a   : > { %v1472_v5 = vpop.eup %1471  ;;  %1058 = vst.msk [vmem:[%s1652_s30 + $0x18] sm:$0xff] %vm1054_vm1, %v1049_v2  ;;  %v1043_v8 = vadd.f32 1.0, %v1470_v3  ;;  %v1068_v14 = vsel %vm1054_vm1, %v1049_v2, 0.0 }
 0x12b   : > { %1057 = vst.msk [vmem:[%s1652_s30 + $0x10] sm:$0xff] %vm1054_vm1, %v1048_v7  ;;  %v1066_v4 = vsel %vm1054_vm1, %v1048_v7, 0.0  ;;  %v1042_v10 = vadd.f32 1.0, %v1472_v5 }
 0x12c   : > { %v1067_v11 = vadd.f32 %v1066_v4, %v1065_v1  ;;  %v1051_v12 = vmul.f32 %v1043_v8, %v1019_v6 }
 0x12d   : > { %v1474_v13 = vpop.eup %1473  ;;  %v1050_v15 = vmul.f32 %v1042_v10, %v1018_v9 }
 0x12e   : > { %v1476_v16 = vpop.eup %1475  ;;  %1060 = vst.msk [vmem:[%s1652_s30 + $0x28] sm:$0xff] %vm1054_vm1, %v1051_v12  ;;  %v1069_v17 = vadd.f32 %v1068_v14, %v1067_v11  ;;  %v1045_v19 = vadd.f32 1.0, %v1474_v13  ;;  %v1072_v25 = vsel %vm1054_vm1, %v1051_v12, 0.0 }
 0x12f   : > { %1059 = vst.msk [vmem:[%s1652_s30 + $0x20] sm:$0xff] %vm1054_vm1, %v1050_v15  ;;  %v1070_v20 = vsel %vm1054_vm1, %v1050_v15, 0.0  ;;  %v1044_v22 = vadd.f32 1.0, %v1476_v16 }
 0x130   : > { %v1071_v23 = vadd.f32 %v1070_v20, %v1069_v17  ;;  %v1053_v24 = vmul.f32 %v1045_v19, %v1021_v18 }
 0x131   : > { %v1052_v26 = vmul.f32 %v1044_v22, %v1020_v21 }
 0x132   : > { %1062 = vst.msk [vmem:[%s1652_s30 + $0x38] sm:$0xff] %vm1054_vm1, %v1053_v24  ;;  %v1073_v27 = vadd.f32 %v1072_v25, %v1071_v23  ;;  %v1076_v30 = vsel %vm1054_vm1, %v1053_v24, 0.0 }
 0x133   : > { %1061 = vst.msk [vmem:[%s1652_s30 + $0x30] sm:$0xff] %vm1054_vm1, %v1052_v26  ;;  %v1074_v28 = vsel %vm1054_vm1, %v1052_v26, 0.0 }
 0x134   : > { %v1075_v29 = vadd.f32 %v1074_v28, %v1073_v27 }
 0x136   : > { %v1077_v31 = vadd.f32 %v1076_v30, %v1075_v29 }
 0x138   : > { %v1078_v32 = vrot.slane %v1077_v31, 4 }
 0x13a   : > { %v1079_v33 = vadd.f32 %v1078_v32, %v1077_v31 }
 0x13c   : > { %v1080_v34 = vrot.slane %v1079_v33, 2 }
 0x13e   : > { %v1081_v35 = vadd.f32 %v1080_v34, %v1079_v33 }
 0x140   : > { %v1082_v36 = vrot.slane %v1081_v35, 1 }
 0x142   : > { %v1083_v37 = vadd.f32 %v1082_v36, %v1081_v35 }
 0x144   : > { %v1084_v38 = vmul.f32 0.015625, %v1083_v37  ;;  %1094 = vst.msk [vmem:[%s1687_s8] sm:$0x1] %vm1093_vm2, %v1083_v37 }
 0x146   : > { %v1085_v39 = vsub.f32 %v1046_v57, %v1084_v38  ;;  %v1086_v40 = vsub.f32 %v1654_v55, %v1084_v38  ;;  %v1087_v41 = vsub.f32 %v1048_v7, %v1084_v38  ;;  %v1088_v42 = vsub.f32 %v1049_v2, %v1084_v38 }
 0x147   : > { %v1089_v43 = vsub.f32 %v1050_v15, %v1084_v38  ;;  %v1090_v44 = vsub.f32 %v1051_v12, %v1084_v38  ;;  %v1091_v45 = vsub.f32 %v1052_v26, %v1084_v38  ;;  %v1092_v46 = vsub.f32 %v1053_v24, %v1084_v38 }
 0x148   : > { %v1095_v47 = vmul.f32 %v1085_v39, %v1085_v39  ;;  %v1096_v48 = vmul.f32 %v1086_v40, %v1086_v40  ;;  %v1097_v49 = vmul.f32 %v1087_v41, %v1087_v41  ;;  %v1098_v50 = vmul.f32 %v1088_v42, %v1088_v42 }
 0x149   : > { %v1099_v54 = vmul.f32 %v1089_v43, %v1089_v43  ;;  %v1100_v55 = vmul.f32 %v1090_v44, %v1090_v44  ;;  %v1101_v60 = vmul.f32 %v1091_v45, %v1091_v45  ;;  %v1102_v63 = vmul.f32 %v1092_v46, %v1092_v46 }
 0x14a   : > { %v1103_v51 = vsel %vm1054_vm1, %v1095_v47, 0.0  ;;  %v1104_v52 = vsel %vm1054_vm1, %v1096_v48, 0.0  ;;  %v1106_v56 = vsel %vm1054_vm1, %v1097_v49, 0.0  ;;  %v1108_v58 = vsel %vm1054_vm1, %v1098_v50, 0.0 }
 0x14b   : > { %v1105_v53 = vadd.f32 %v1104_v52, %v1103_v51  ;;  %v1110_v61 = vsel %vm1054_vm1, %v1099_v54, 0.0  ;;  %v1112_v0 = vsel %vm1054_vm1, %v1100_v55, 0.0  ;;  %v1114_v2 = vsel %vm1054_vm1, %v1101_v60, 0.0 }
 0x14c   : > { %v1116_v7 = vsel %vm1054_vm1, %v1102_v63, 0.0 }
 0x14d   : > { %v1107_v57 = vadd.f32 %v1106_v56, %v1105_v53 }
 0x14f   : > { %v1109_v59 = vadd.f32 %v1108_v58, %v1107_v57 }
 0x151   : > { %v1111_v62 = vadd.f32 %v1110_v61, %v1109_v59 }
 0x153   : > { %v1113_v1 = vadd.f32 %v1112_v0, %v1111_v62 }
 0x155   : > { %v1115_v3 = vadd.f32 %v1114_v2, %v1113_v1 }
 0x157   : > { %v1117_v5 = vadd.f32 %v1116_v7, %v1115_v3 }
 0x159   : > { %v1118_v6 = vrot.slane %v1117_v5, 4 }
 0x15b   : > { %v1119_v8 = vadd.f32 %v1118_v6, %v1117_v5 }
 0x15d   : > { %v1120_v4 = vrot.slane %v1119_v8, 2 }
 0x15f   : > { %v1121_v9 = vadd.f32 %v1120_v4, %v1119_v8 }
 0x161   : > { %v1122_v10 = vrot.slane %v1121_v9, 1 }
 0x163   : > { %v1123_v11 = vadd.f32 %v1122_v10, %v1121_v9 }
 0x165   : > { %1124 = vst.msk [vmem:[%s1687_s8 + $0x1] sm:$0x1] %vm1093_vm2, %v1123_v11 }
 0x166 PF: > { %s15_s15 = sadd.s32 1, %s1483_s15  }
 0x167   : > { %p12_p5 = scmp.ge.s32.totalorder %s15_s15, 4  }
 0x169   :  { %14 = sbr.rel (!%p12_p5) target bundleno = 1 (0x1), region = 74 }

// kernel: _lambda_.5
= control target key start
LH: loop header
LB: loop body
LE: loop exit
PB: predicated region body
PF: predicated region fallthrough
CT: control target
= control target key end

     0   :  { %s1182_s15 = smov 0   ;;  %s1351_s0 = inlined_call_operand.vmem [shape: f32[16,64], index: 0, kind: input, shape index: {}]   ;;  %s1352_s1 = inlined_call_operand.vmem [shape: f32[64,32], index: 1, kind: input, shape index: {}]   ;;  %s1353_s2 = inlined_call_operand.vmem [shape: f32[1,32], index: 2, kind: input, shape index: {}]   ;;  %s1354_s3 = inlined_call_operand.vmem [shape: f32[16,32], index: 3, kind: output, shape index: {0}]   ;;  %s1355_s4 = inlined_call_operand.vmem [shape: f32[2,2,32], index: 4, kind: output, shape index: {1}]  }
   0x1 LB: > { %s872_s16 = sadd.s32 4294967295, %s1152_s15   ;;  %p876_p0 = scmp.ge.s32.totalorder %s1152_s15, 1  ;;  %s1152_s15 = sphi %s1182_s15, %s15_s15  }
   0x2   : > { %p164_p1 = scmp.lt.s32.totalorder %s1152_s15, 3 }
   0x4   : > { %p165_p2 = pnand %p876_p0, %p164_p1 }
   0x5   : > { %v205_v0 = vld [vmem:[%s1352_s1] sm:$0xff] (!%p165_p2)  ;;  %v206_v1 = vld [vmem:[%s1352_s1 + $0x8] sm:$0xff] (!%p165_p2)  ;;  %v207_v2 = vld [vmem:[%s1352_s1 + $0x10] sm:$0xff] (!%p165_p2)  ;;  %v1154_v3 = vmov (!%p165_p2), 0.0|0.0   ;;  %vm1155_vm0 = vmmov (!%p165_p2), 0   ;;  %v1156_v11 = vmov (!%p165_p2), 0.0  }
   0x6   : > { %168 = sbr.rel (%p165_p2) target bundleno = 326 (0x146), region = 32  ;;  %1051 = vmatprep.subr.bf16.mxu1 (!%p165_p2), %v1154_v3  ;;  %1087 = vmatprep.subr.bf16.mxu0 (!%p165_p2), %v1154_v3  ;;  %v225_v4 = vand.u32 (!%p165_p2), 4294901760, %v205_v0  ;;  %v228_v5 = vand.u32 (!%p165_p2), 4294901760, %v206_v1  ;;  %v208_v6 = vld [vmem:[%s1352_s1 + $0x18] sm:$0xff] (!%p165_p2)  ;;  %v231_v7 = vand.u32 (!%p165_p2), 4294901760, %v207_v2  ;;  %v209_v8 = vld [vmem:[%s1352_s1 + $0x20] sm:$0xff] (!%p165_p2) }
   0x7   : > { %v210_v9 = vld [vmem:[%s1352_s1 + $0x28] sm:$0xff] (!%p165_p2)  ;;  %v234_v10 = vand.u32 (!%p165_p2), 4294901760, %v208_v6  ;;  %953 = vmatprep.mubr.msk.f32.mxu1 (!%p165_p2), %vm1155_vm0, %v1156_v11  ;;  %1010 = vmatprep.mubr.msk.f32.mxu0 (!%p165_p2), %vm1155_vm0, %v1156_v11  ;;  %p192_p3 = scmp.lt.s32.totalorder (!%p165_p2), %s872_s16, 1  ;;  %v237_v17 = vand.u32 (!%p165_p2), 4294901760, %v209_v8  ;;  %v211_v19 = vld [vmem:[%s1352_s1 + $0x30] sm:$0xff] (!%p165_p2)  ;;  %v212_v20 = vld [vmem:[%s1352_s1 + $0x38] sm:$0xff] (!%p165_p2) }
   0x8   : > { %v1216_v12 = vpack.c.bf16 (!%p165_p2), %v228_v5, %v225_v4  ;;  %v1218_v13 = vsub.f32 (!%p165_p2), %v205_v0, %v225_v4  ;;  %v1220_v14 = vsub.f32 (!%p165_p2), %v206_v1, %v228_v5  ;;  %v1222_v15 = vsub.f32 (!%p165_p2), %v207_v2, %v231_v7 }
   0x9   : > { %v1224_v16 = vsub.f32 (!%p165_p2), %v208_v6, %v234_v10  ;;  %v240_v18 = vand.u32 (!%p165_p2), 4294901760, %v210_v9  ;;  %v1238_v21 = vpack.c.bf16 (!%p165_p2), %v234_v10, %v231_v7  ;;  %vm220_vm1 = vcmask (!%p165_p2), 523264   ;;  %v880_v10 = vld [vmem:[%s1353_s2] ss:$0 sm:$0xff] (!%p165_p2) }
   0xa   : > { %1053 = vmatpush3.bf16.msra.mxu1 (!%p165_p2), %v1216_v12  ;;  %1089 = vmatpush3.bf16.msra.mxu0 (!%p165_p2), %v1216_v12  ;;  %v310_v22 = vand.u32 (!%p165_p2), 4294901760, %v1218_v13  ;;  %v317_v23 = vand.u32 (!%p165_p2), 4294901760, %v1220_v14  ;;  %v243_v24 = vand.u32 (!%p165_p2), 4294901760, %v211_v19  ;;  %v246_v25 = vand.u32 (!%p165_p2), 4294901760, %v212_v20 }
   0xb   : > { %1054 = vmatprep.subr.bf16.mxu1 (!%p165_p2), %v1154_v3  ;;  %1090 = vmatprep.subr.bf16.mxu0 (!%p165_p2), %v1154_v3  ;;  %v1250_v26 = vpack.c.bf16 (!%p165_p2), %v240_v18, %v237_v17  ;;  %v1252_v27 = vsub.f32 (!%p165_p2), %v209_v8, %v237_v17  ;;  %v324_v29 = vand.u32 (!%p165_p2), 4294901760, %v1222_v15  ;;  %v331_v30 = vand.u32 (!%p165_p2), 4294901760, %v1224_v16 }
   0xc   : > { %v1258_v31 = vsub.f32 (!%p165_p2), %v210_v9, %v240_v18  ;;  %v311_v33 = vsub.f32 (!%p165_p2), %v1218_v13, %v310_v22  ;;  %v318_v34 = vsub.f32 (!%p165_p2), %v1220_v14, %v317_v23  ;;  %v1266_v36 = vpack.c.bf16 (!%p165_p2), %v246_v25, %v243_v24 }
   0xd   : > { %s1357_s16 = smov (!%p192_p3, %s872_s16), 1  ;;  %v1268_v37 = vsub.f32 %v211_v19, %v243_v24  ;;  %v325_v39 = vsub.f32 %v1222_v15, %v324_v29  ;;  %v332_v40 = vsub.f32 %v1224_v16, %v331_v30  ;;  %v338_v41 = vand.u32 4294901760, %v1252_v27 }
   0xe   : > { %s877_s7 = sshll.u32 %s1357_s16, 3  ;;  %1056 = vmatpush3.bf16.msra.mxu1 %v1238_v21  ;;  %1092 = vmatpush3.bf16.msra.mxu0 %v1238_v21  ;;  %v1278_v42 = vsub.f32 %v212_v20, %v246_v25  ;;  %v312_v43 = vand.u32 4294901760, %v311_v33  ;;  %v319_v44 = vand.u32 4294901760, %v318_v34  ;;  %v345_v45 = vand.u32 4294901760, %v1258_v31  ;;  %s879_s18 = sshll.u32 %s1357_s16, 1 }
   0xf   : > { %s195_s10 = scalar_lea.vmem %s1351_s0, %s877_s7  ;;  %1057 = vmatprep.subr.bf16.mxu1 %v1154_v3  ;;  %1093 = vmatprep.subr.bf16.mxu0 %v1154_v3  ;;  %v1100_v47 = vpack.c.bf16 %v317_v23, %v310_v22  ;;  %v326_v49 = vand.u32 4294901760, %v325_v39  ;;  %v333_v50 = vand.u32 4294901760, %v332_v40  ;;  %v339_v51 = vsub.f32 %v1252_v27, %v338_v41  ;;  %s199_s17 = scalar_lea.vmem %s1354_s3, %s877_s7 }
  0x10   : > { %v204_v28 = vld [vmem:[%s195_s10] sm:$0xff]  ;;  %v1064_v52 = vpack.c.bf16 %v319_v44, %v312_v43  ;;  %v346_v53 = vsub.f32 %v1258_v31, %v345_v45  ;;  %v352_v54 = vand.u32 4294901760, %v1268_v37  ;;  %v359_v55 = vand.u32 4294901760, %v1278_v42  ;;  %s203_s21 = scalar_lea.vmem %s1355_s4, %s879_s18 }
  0x11   : > { %v222_v32 = vsel %vm220_vm1, %v204_v28, 0  ;;  %v1103_v57 = vpack.c.bf16 %v331_v30, %v324_v29  ;;  %v340_v58 = vand.u32 4294901760, %v339_v51  ;;  %v1067_v59 = vpack.c.bf16 %v333_v50, %v326_v49 }
  0x12   : > { %v1264_v35 = vand.u32 4294901760, %v222_v32  ;;  %1059 = vmatpush3.bf16.msra.mxu1 %v1250_v26  ;;  %1095 = vmatpush3.bf16.msra.mxu0 %v1250_v26  ;;  %v347_v60 = vand.u32 4294901760, %v346_v53  ;;  %v353_v61 = vsub.f32 %v1268_v37, %v352_v54  ;;  %v360_v62 = vsub.f32 %v1278_v42, %v359_v55 }
  0x13   : > { %1060 = vmatprep.subr.bf16.mxu1 %v1154_v3  ;;  %1096 = vmatprep.subr.bf16.mxu0 %v1154_v3  ;;  %v1106_v0 = vpack.c.bf16 %v345_v45, %v338_v41  ;;  %v1109_v5 = vpack.c.bf16 %v359_v55, %v352_v54  ;;  %v1076_v6 = vpack.c.bf16 %v1220_v14, %v1218_v13  ;;  %vm766_vm2 = vcmask 261120  }
  0x14   : > { %v1271_v38 = vsub.f32 %v222_v32, %v1264_v35  ;;  %v1070_v63 = vpack.c.bf16 %v347_v60, %v340_v58  ;;  %v354_v1 = vand.u32 4294901760, %v353_v61  ;;  %v361_v2 = vand.u32 4294901760, %v360_v62 }
  0x15   : > { %v1079_v7 = vpack.c.bf16 %v1224_v16, %v1222_v15  ;;  %v1082_v8 = vpack.c.bf16 %v1258_v31, %v1252_v27  ;;  %v1085_v9 = vpack.c.bf16 %v1278_v42, %v1268_v37  ;;  %vm777_vm3 = vcmask 253952  }
  0x16   : > { %v299_v46 = vand.u32 4294901760, %v1271_v38  ;;  %1062 = vmatpush3.bf16.msra.mxu1 %v1266_v36  ;;  %1098 = vmatpush3.bf16.msra.mxu0 %v1266_v36  ;;  %v1073_v4 = vpack.c.bf16 %v361_v2, %v354_v1 }
  0x17   : > { %1063 = vmatprep.subr.bf16.mxu1 %v1154_v3  ;;  %1099 = vmatprep.subr.bf16.mxu0 %v1154_v3 }
  0x18   : > { %v300_v48 = vsub.f32 %v1271_v38, %v299_v46 }
  0x19   : > { %1011 = vmatmul.mubr.f32.vlgmr.msra.gmra.mrb[0].mxu0 %v299_v46 }
  0x1a   : > { %v301_v56 = vand.u32 4294901760, %v300_v48  ;;  %1101 = vmatpush3.bf16.msra.mxu0 %v1100_v47  ;;  %1029 = vmatprep.mubr.msk.f32.mxu0 %vm1155_vm0, %v1156_v11 }
  0x1b   : > { %1102 = vmatprep.subr.bf16.mxu0 %v1154_v3 }
  0x1c   : > { %954 = vmatmul.mubr.f32.vlgmr.msra.gmra.mrb[0].mxu1 %v301_v56 }
  0x1d   : > { %1065 = vmatpush3.bf16.msra.mxu1 %v1064_v52  ;;  %972 = vmatprep.mubr.msk.f32.mxu1 %vm1155_vm0, %v1156_v11 }
  0x1e   : > { %1066 = vmatprep.subr.bf16.mxu1 %v1154_v3  ;;  %1104 = vmatpush3.bf16.msra.mxu0 %v1103_v57 }
  0x1f   : > { %1105 = vmatprep.subr.bf16.mxu0 %v1154_v3 }
  0x21   : > { %1068 = vmatpush3.bf16.msra.mxu1 %v1067_v59 }
  0x22   : > { %1069 = vmatprep.subr.bf16.mxu1 %v1154_v3  ;;  %1107 = vmatpush3.bf16.msra.mxu0 %v1106_v0 }
  0x23   : > { %1108 = vmatprep.subr.bf16.mxu0 %v1154_v3 }
  0x25   : > { %1071 = vmatpush3.bf16.msra.mxu1 %v1070_v63 }
  0x26   : > { %1072 = vmatprep.subr.bf16.mxu1 %v1154_v3  ;;  %1110 = vmatpush3.bf16.msra.mxu0 %v1109_v5 }
  0x27   : > { %1111 = vmatprep.subr.bf16.mxu0 %v1154_v3 }
  0x29   : > { %1074 = vmatpush3.bf16.msra.mxu1 %v1073_v4  ;;  %1030 = vmatmul.mubr.f32.vlgmr.msra.gmra.mrb[0].mxu0 %v1264_v35 }
  0x2a   : > { %1075 = vmatprep.subr.bf16.mxu1 %v1154_v3  ;;  %1113 = vmatpush3.bf16.msra.mxu0 %v1216_v12 }
  0x2b   : > { %1114 = vmatprep.subr.bf16.mxu0 %v1154_v3  ;;  %1048 = vmatprep.mubr.msk.f32.mxu0 %vm1155_vm0, %v1156_v11 }
  0x2c   : > { %973 = vmatmul.mubr.f32.vlgmr.msra.gmra.mrb[0].mxu1 %v1264_v35 }
  0x2d   : > { %1077 = vmatpush3.bf16.msra.mxu1 %v1076_v6  ;;  %991 = vmatprep.mubr.msk.f32.mxu1 %vm1155_vm0, %v1156_v11 }
  0x2e   : > { %1078 = vmatprep.subr.bf16.mxu1 %v1154_v3  ;;  %1116 = vmatpush3.bf16.msra.mxu0 %v1238_v21 }
  0x2f   : > { %1117 = vmatprep.subr.bf16.mxu0 %v1154_v3 }
  0x31   : > { %1080 = vmatpush3.bf16.msra.mxu1 %v1079_v7 }
  0x32   : > { %1081 = vmatprep.subr.bf16.mxu1 %v1154_v3  ;;  %1119 = vmatpush3.bf16.msra.mxu0 %v1250_v26 }
  0x33   : > { %1120 = vmatprep.subr.bf16.mxu0 %v1154_v3 }
  0x35   : > { %1083 = vmatpush3.bf16.msra.mxu1 %v1082_v8 }
  0x36   : > { %1084 = vmatprep.subr.bf16.mxu1 %v1154_v3  ;;  %1122 = vmatpush3.bf16.msra.mxu0 %v1266_v36 }
  0x39   : > { %1086 = vmatpush3.bf16.msra.mxu1 %v1085_v9  ;;  %1049 = vmatmul.mubr.f32.vlgmr.msra.gmra.mrb[0].mxu0 %v1264_v35 }
  0x3c   : > { %992 = vmatmul.mubr.f32.vlgmr.msra.gmra.mrb[0].mxu1 %v1271_v38 }
 0x10c   : > { %v757_v12 = vpop.f32.mrb[0].mxu0 }
 0x10d   : > { %v1050_v15 = vpop.f32.mrb[1].mxu0 }
 0x10f   : > { %v502_v11 = vpop.f32.mrb[0].mxu1 }
 0x110   : > { %v1123_v13 = vadd.f32 %v880_v10, %v502_v11  ;;  %v993_v14 = vpop.f32.mrb[1].mxu1 }
 0x112   : > { %v1124_v16 = vadd.f32 %v1123_v13, %v757_v12 }
 0x114   : > { %v762_v3 = vmul.f32 0.70710677, %v1124_v16  ;;  %v761_v18 = vmul.f32 0.5, %v1124_v16 }
 0x116   : > { %1144 = verf.f32 %v762_v3 }
 0x120   : > { %v1145_v17 = vpop.eup %1144 }
 0x121   : > { %v764_v19 = vadd.f32 1.0, %v1145_v17 }
 0x123   : > { %v765_v20 = vmul.f32 %v764_v19, %v761_v18 }
 0x125   : > { %767 = vst.msk [vmem:[%s199_s17] sm:$0xff] %vm766_vm2, %v765_v20  ;;  %v768_v21 = vsel %vm766_vm2, %v765_v20, 0.0 }
 0x126   : > { %v769_v22 = vrot.slane %v768_v21, 4 }
 0x128   : > { %v770_v23 = vadd.f32 %v769_v22, %v768_v21 }
 0x12a   : > { %v771_v24 = vrot.slane %v770_v23, 2 }
 0x12c   : > { %v772_v25 = vadd.f32 %v771_v24, %v770_v23 }
 0x12e   : > { %v773_v26 = vrot.slane %v772_v25, 1 }
 0x130   : > { %v774_v27 = vadd.f32 %v773_v26, %v772_v25 }
 0x132   : > { %v775_v28 = vmul.f32 0.125, %v774_v27  ;;  %778 = vst.msk [vmem:[%s203_s21] sm:$0x1] %vm777_vm3, %v774_v27 }
 0x134   : > { %v776_v29 = vsub.f32 %v765_v20, %v775_v28 }
 0x136   : > { %v779_v30 = vmul.f32 %v776_v29, %v776_v29 }
 0x138   : > { %v780_v31 = vsel %vm766_vm2, %v779_v30, 0.0 }
 0x139   : > { %v781_v32 = vrot.slane %v780_v31, 4 }
 0x13b   : > { %v782_v33 = vadd.f32 %v781_v32, %v780_v31 }
 0x13d   : > { %v783_v34 = vrot.slane %v782_v33, 2 }
 0x13f   : > { %v784_v35 = vadd.f32 %v783_v34, %v782_v33 }
 0x141   : > { %v785_v36 = vrot.slane %v784_v35, 1 }
 0x143   : > { %v786_v37 = vadd.f32 %v785_v36, %v784_v35 }
 0x145   : > { %787 = vst.msk [vmem:[%s203_s21 + $0x1] sm:$0x1] %vm777_vm3, %v786_v37 }
 0x146 PF: > { %s15_s15 = sadd.s32 1, %s1152_s15  }
 0x147   : > { %p12_p4 = scmp.ge.s32.totalorder %s15_s15, 4  }
 0x149   :  { %14 = sbr.rel (!%p12_p4) target bundleno = 1 (0x1), region = 74 }

</bundles_post_ra>
